<compile_context>
chip_gen: v6e
topology: v6e:2x2x1
jax: 0.10.0
libtpu: 0.0.40
codegen_flags: <defaults>
</compile_context>

<pallas_src>
import jax
import jax.numpy as jnp
from jax.experimental import pallas as pl
from jax.experimental.pallas import tpu as pltpu

# ---------------- model configuration (scaled-down, structure-exact) -------
SUBNETWORK = 7
ATTR_SPLIT = (9, 10, 5, 2, 9, 3, 2)     # per-subnetwork head widths
ATTRS = sum(ATTR_SPLIT)                  # 40
OUT_PAD = 128                            # lane-dense padded output width
D = 128                                  # input_dim (orig 512)
H1 = 256                                 # hidden 1  (orig 2048)
H2 = 128                                 # hidden 2  (orig 512)
BATCH = 8

_OFFSETS = []
_off = 0
for _n in ATTR_SPLIT:
    _OFFSETS.append(_off)
    _off += _n


# ---------------------------- Pallas kernel --------------------------------
def _location02_kernel(x_ref, w1_ref, b1_ref, w2_ref, b2_ref, w3_ref, b3_ref,
                       out_ref):
    x = x_ref[...]                                            # bf16 (bm, D)

    # fc1 for all 7 subnetworks fused along N: one (bm,D)x(D,7*H1) matmul.
    h1 = jnp.dot(x, w1_ref[...],
                 preferred_element_type=jnp.float32) + b1_ref[...]
    h1 = h1.astype(jnp.bfloat16)                              # (bm, 7*H1)

    # fc2 per subnetwork: lane-aligned (multiple-of-256) static slices of h1.
    h2_parts = []
    for i in range(SUBNETWORK):
        h1_i = h1[:, i * H1:(i + 1) * H1]                     # (bm, H1)
        h2_i = jnp.dot(h1_i, w2_ref[i],
                       preferred_element_type=jnp.float32) + b2_ref[i]
        h2_parts.append(h2_i.astype(jnp.bfloat16))
    h2 = jnp.concatenate(h2_parts, axis=-1)                   # (bm, 7*H2)

    # fc3 (heads) fused along K: one (bm,7*H2)x(7*H2,OUT_PAD) matmul whose
    # weight is block-column structured, so every head's contribution
    # accumulates inside the MXU and lands in its own disjoint column band of
    # the 128-lane output slab (single full-width unmasked store).
    y = jnp.dot(h2, w3_ref[...],
                preferred_element_type=jnp.float32) + b3_ref[...]

    # sigmoid with exp + divide on the EUP slot.
    out_ref[...] = pl.reciprocal(1.0 + jnp.exp(-y), approx=True)


def _round_up(n, m):
    return (n + m - 1) // m * m


def _cdiv(a, b):
    return (a + b - 1) // b


def _rep_spec(shape):
    # Whole (grid-invariant) parameter block for every batch tile;
    # single-buffered since the block index never changes.
    ndim = len(shape)
    return pl.BlockSpec(shape, lambda i, _n=ndim: (0,) * _n,
                        pipeline_mode=pl.Buffered(1))


@jax.jit
def feature_classifier_forward(x, params):
    """x: (B, ...) -> res: (B, 40). Mirrors FeatureClassfierLocation02.forward."""
    B = x.shape[0]
    x = x.reshape(B, -1).astype(jnp.bfloat16)          # x.view(x.size(0), -1)
    assert x.shape[1] == D

    # Tight batch tile: as close to an even split of B over ceil(B/128) tiles
    # as possible, rounded to a multiple of 16 (bf16 sublane packing).
    bm = _round_up(_cdiv(B, _cdiv(B, 128)), 16)
    Bp = _round_up(B, bm)                               # pad: never drop rows
    if Bp != B:
        x = jnp.pad(x, ((0, Bp - B), (0, 0)))

    in_specs = [pl.BlockSpec((bm, D), lambda i: (i, 0))]
    in_specs += [_rep_spec(p.shape) for p in params]
    out_specs = pl.BlockSpec((bm, OUT_PAD), lambda i: (i, 0))

    y = pl.pallas_call(
        _location02_kernel,
        out_shape=jax.ShapeDtypeStruct((Bp, OUT_PAD), jnp.float32),
        grid_spec=pltpu.PrefetchScalarGridSpec(
            num_scalar_prefetch=0,
            grid=(Bp // bm,),
            in_specs=in_specs,
            out_specs=out_specs,
        ),
        compiler_params=pltpu.CompilerParams(
            dimension_semantics=("parallel",)),   # batch axis -> megacore
    )(x, *params)
    return y[:B, :ATTRS]


# ------------------------- parameter construction --------------------------
def make_params(key):
    """Returns (kernel_params, raw_per_subnetwork_params)."""
    keys = jax.random.split(key, 6 * SUBNETWORK)
    kit = iter(keys)

    def nrm(shape, s=0.05):
        return (s * jax.random.normal(next(kit), shape)).astype(jnp.float32)

    raw = []
    for i in range(SUBNETWORK):
        w1 = nrm((D, H1));              b1 = nrm((H1,))
        w2 = nrm((H1, H2));             b2 = nrm((H2,))
        w3 = nrm((H2, ATTR_SPLIT[i]));  b3 = nrm((ATTR_SPLIT[i],))
        raw.append((w1, b1, w2, b2, w3, b3))

    # fc1 fused along the output axis: (D, 7*H1) bf16, bias (1, 7*H1) f32.
    w1_cat = jnp.concatenate([r[0] for r in raw], axis=1).astype(jnp.bfloat16)
    b1_cat = jnp.concatenate([r[1] for r in raw])[None, :]

    # fc2 kept stacked per subnetwork.
    w2s = jnp.stack([r[2] for r in raw]).astype(jnp.bfloat16)   # (S, H1, H2)
    b2s = jnp.stack([r[3] for r in raw])[:, None, :]            # (S, 1, H2)

    # fc3 fused along K with block-column structure into the 128-lane slab:
    # rows [i*H2:(i+1)*H2] x cols [off_i:off_i+n_i] hold subnetwork i's head.
    w3_cat = jnp.zeros((SUBNETWORK * H2, OUT_PAD), jnp.float32)
    b3p = jnp.zeros((1, OUT_PAD), jnp.float32)
    for i, (off, n) in enumerate(zip(_OFFSETS, ATTR_SPLIT)):
        w3_cat = w3_cat.at[i * H2:(i + 1) * H2, off:off + n].set(raw[i][4])
        b3p = b3p.at[0, off:off + n].set(raw[i][5])
    w3_cat = w3_cat.astype(jnp.bfloat16)

    kernel_params = (w1_cat, b1_cat, w2s, b2s, w3_cat, b3p)
    return kernel_params, raw


# ------------------------- pure-JAX reference (sanity) ---------------------
def reference_forward(x, raw_params):
    """Mirror of the torch module, with the same bf16 weight/activation casts."""
    x = x.reshape(x.shape[0], -1)
    xb = x.astype(jnp.bfloat16)
    outs = []
    for (w1, b1, w2, b2, w3, b3) in raw_params:
        h1 = jnp.dot(xb, w1.astype(jnp.bfloat16),
                     preferred_element_type=jnp.float32) + b1
        h2 = jnp.dot(h1.astype(jnp.bfloat16), w2.astype(jnp.bfloat16),
                     preferred_element_type=jnp.float32) + b2
        yi = jnp.dot(h2.astype(jnp.bfloat16), w3.astype(jnp.bfloat16),
                     preferred_element_type=jnp.float32) + b3
        outs.append(yi)
    return jax.nn.sigmoid(jnp.concatenate(outs, axis=1))


# --------------------------------- main -------------------------------------
if __name__ == "__main__":
    key = jax.random.PRNGKey(0)
    kx, kp = jax.random.split(key)
    kernel_params, raw_params = make_params(kp)

    # 1) tiny batch (single grid step).
    x_small = jax.random.normal(kx, (BATCH, D), dtype=jnp.float32)
    res = feature_classifier_forward(x_small, kernel_params)
    jax.block_until_ready(res)
    ref = reference_forward(x_small, raw_params)
    assert res.shape == (BATCH, ATTRS)
    assert jnp.allclose(res, ref, atol=5e-3, rtol=0.0)

    # 2) larger, non-multiple batch: exercises the tight bm=112 tiling, batch
    #    padding (no dropped rows) and the 2-step parallel grid (megacore).
    x_big = jax.random.normal(jax.random.PRNGKey(1), (200, D), dtype=jnp.float32)
    res_big = feature_classifier_forward(x_big, kernel_params)
    jax.block_until_ready(res_big)
    ref_big = reference_forward(x_big, raw_params)
    assert res_big.shape == (200, ATTRS)
    assert jnp.allclose(res_big, ref_big, atol=5e-3, rtol=0.0)

    print("KERNEL_OK")
</pallas_src>

<mosaic_0001>
module attributes {stable_mosaic.version = 11 : i64} {
  func.func @_location02_kernel(%arg0: i32, %arg1: memref<16x128xbf16, #tpu.memory_space<vmem>>, %arg2: memref<128x1792xbf16, #tpu.memory_space<vmem>>, %arg3: memref<1x1792xf32, #tpu.memory_space<vmem>>, %arg4: memref<7x256x128xbf16, #tpu.memory_space<vmem>>, %arg5: memref<7x1x128xf32, #tpu.memory_space<vmem>>, %arg6: memref<896x128xbf16, #tpu.memory_space<vmem>>, %arg7: memref<1x128xf32, #tpu.memory_space<vmem>>, %arg8: memref<16x128xf32, #tpu.memory_space<vmem>>) attributes {dimension_semantics = [#tpu.dimension_semantics<parallel>], iteration_bounds = array<i64: 1>, scalar_prefetch = 0 : i64, scratch_operands = 0 : i64, tpu.core_type = #tpu.core_type<tc>, window_params = [{transform_indices = @transform_0, window_bounds = array<i64: 16, 128>}, {pipeline_mode = #tpu.pipeline_mode<synchronous>, transform_indices = @transform_1, window_bounds = array<i64: 128, 1792>}, {pipeline_mode = #tpu.pipeline_mode<synchronous>, transform_indices = @transform_2, window_bounds = array<i64: 1, 1792>}, {pipeline_mode = #tpu.pipeline_mode<synchronous>, transform_indices = @transform_3, window_bounds = array<i64: 7, 256, 128>}, {pipeline_mode = #tpu.pipeline_mode<synchronous>, transform_indices = @transform_4, window_bounds = array<i64: 7, 1, 128>}, {pipeline_mode = #tpu.pipeline_mode<synchronous>, transform_indices = @transform_5, window_bounds = array<i64: 896, 128>}, {pipeline_mode = #tpu.pipeline_mode<synchronous>, transform_indices = @transform_6, window_bounds = array<i64: 1, 128>}, {transform_indices = @transform_7, window_bounds = array<i64: 16, 128>}]} {
    %c0 = arith.constant 0 : index
    %c0_0 = arith.constant 0 : index
    %0 = vector.load %arg1[%c0, %c0_0] : memref<16x128xbf16, #tpu.memory_space<vmem>>, vector<16x128xbf16>
    %c0_1 = arith.constant 0 : index
    %c0_2 = arith.constant 0 : index
    %1 = vector.load %arg2[%c0_1, %c0_2] : memref<128x1792xbf16, #tpu.memory_space<vmem>>, vector<128x1792xbf16>
    %cst = arith.constant dense<0.000000e+00> : vector<16x1792xf32>
    %2 = tpu.matmul %0, %1, %cst {dimension_numbers = #tpu.dot_dimension_numbers<[1], [0], [0], [1], [0, 0, 1, 1], [], []>} : vector<16x128xbf16>, vector<128x1792xbf16>, vector<16x1792xf32> -> vector<16x1792xf32>
    %c0_3 = arith.constant 0 : index
    %c0_4 = arith.constant 0 : index
    %3 = vector.load %arg3[%c0_3, %c0_4] : memref<1x1792xf32, #tpu.memory_space<vmem>>, vector<1x1792xf32>
    %4 = vector.broadcast %3 : vector<1x1792xf32> to vector<16x1792xf32>
    %5 = arith.addf %2, %4 : vector<16x1792xf32>
    %6 = arith.truncf %5 : vector<16x1792xf32> to vector<16x1792xbf16>
    %7 = vector.extract_strided_slice %6 {offsets = [0, 0], sizes = [16, 256], strides = [1, 1]} : vector<16x1792xbf16> to vector<16x256xbf16>
    %c0_5 = arith.constant 0 : index
    %c0_6 = arith.constant 0 : index
    %c0_7 = arith.constant 0 : index
    %8 = vector.load %arg4[%c0_5, %c0_6, %c0_7] : memref<7x256x128xbf16, #tpu.memory_space<vmem>>, vector<1x256x128xbf16>
    %9 = vector.shape_cast %8 : vector<1x256x128xbf16> to vector<256x128xbf16>
    %cst_8 = arith.constant dense<0.000000e+00> : vector<16x128xf32>
    %10 = tpu.matmul %7, %9, %cst_8 {dimension_numbers = #tpu.dot_dimension_numbers<[1], [0], [0], [1], [0, 0, 1, 1], [], []>} : vector<16x256xbf16>, vector<256x128xbf16>, vector<16x128xf32> -> vector<16x128xf32>
    %c0_9 = arith.constant 0 : index
    %c0_10 = arith.constant 0 : index
    %c0_11 = arith.constant 0 : index
    %11 = vector.load %arg5[%c0_9, %c0_10, %c0_11] : memref<7x1x128xf32, #tpu.memory_space<vmem>>, vector<1x1x128xf32>
    %12 = vector.shape_cast %11 : vector<1x1x128xf32> to vector<1x128xf32>
    %13 = vector.broadcast %12 : vector<1x128xf32> to vector<16x128xf32>
    %14 = arith.addf %10, %13 : vector<16x128xf32>
    %15 = arith.truncf %14 : vector<16x128xf32> to vector<16x128xbf16>
    %16 = vector.extract_strided_slice %6 {offsets = [0, 256], sizes = [16, 256], strides = [1, 1]} : vector<16x1792xbf16> to vector<16x256xbf16>
    %c1 = arith.constant 1 : index
    %c0_12 = arith.constant 0 : index
    %c0_13 = arith.constant 0 : index
    %17 = vector.load %arg4[%c1, %c0_12, %c0_13] : memref<7x256x128xbf16, #tpu.memory_space<vmem>>, vector<1x256x128xbf16>
    %18 = vector.shape_cast %17 : vector<1x256x128xbf16> to vector<256x128xbf16>
    %cst_14 = arith.constant dense<0.000000e+00> : vector<16x128xf32>
    %19 = tpu.matmul %16, %18, %cst_14 {dimension_numbers = #tpu.dot_dimension_numbers<[1], [0], [0], [1], [0, 0, 1, 1], [], []>} : vector<16x256xbf16>, vector<256x128xbf16>, vector<16x128xf32> -> vector<16x128xf32>
    %c1_15 = arith.constant 1 : index
    %c0_16 = arith.constant 0 : index
    %c0_17 = arith.constant 0 : index
    %20 = vector.load %arg5[%c1_15, %c0_16, %c0_17] : memref<7x1x128xf32, #tpu.memory_space<vmem>>, vector<1x1x128xf32>
    %21 = vector.shape_cast %20 : vector<1x1x128xf32> to vector<1x128xf32>
    %22 = vector.broadcast %21 : vector<1x128xf32> to vector<16x128xf32>
    %23 = arith.addf %19, %22 : vector<16x128xf32>
    %24 = arith.truncf %23 : vector<16x128xf32> to vector<16x128xbf16>
    %25 = vector.extract_strided_slice %6 {offsets = [0, 512], sizes = [16, 256], strides = [1, 1]} : vector<16x1792xbf16> to vector<16x256xbf16>
    %c2 = arith.constant 2 : index
    %c0_18 = arith.constant 0 : index
    %c0_19 = arith.constant 0 : index
    %26 = vector.load %arg4[%c2, %c0_18, %c0_19] : memref<7x256x128xbf16, #tpu.memory_space<vmem>>, vector<1x256x128xbf16>
    %27 = vector.shape_cast %26 : vector<1x256x128xbf16> to vector<256x128xbf16>
    %cst_20 = arith.constant dense<0.000000e+00> : vector<16x128xf32>
    %28 = tpu.matmul %25, %27, %cst_20 {dimension_numbers = #tpu.dot_dimension_numbers<[1], [0], [0], [1], [0, 0, 1, 1], [], []>} : vector<16x256xbf16>, vector<256x128xbf16>, vector<16x128xf32> -> vector<16x128xf32>
    %c2_21 = arith.constant 2 : index
    %c0_22 = arith.constant 0 : index
    %c0_23 = arith.constant 0 : index
    %29 = vector.load %arg5[%c2_21, %c0_22, %c0_23] : memref<7x1x128xf32, #tpu.memory_space<vmem>>, vector<1x1x128xf32>
    %30 = vector.shape_cast %29 : vector<1x1x128xf32> to vector<1x128xf32>
    %31 = vector.broadcast %30 : vector<1x128xf32> to vector<16x128xf32>
    %32 = arith.addf %28, %31 : vector<16x128xf32>
    %33 = arith.truncf %32 : vector<16x128xf32> to vector<16x128xbf16>
    %34 = vector.extract_strided_slice %6 {offsets = [0, 768], sizes = [16, 256], strides = [1, 1]} : vector<16x1792xbf16> to vector<16x256xbf16>
    %c3 = arith.constant 3 : index
    %c0_24 = arith.constant 0 : index
    %c0_25 = arith.constant 0 : index
    %35 = vector.load %arg4[%c3, %c0_24, %c0_25] : memref<7x256x128xbf16, #tpu.memory_space<vmem>>, vector<1x256x128xbf16>
    %36 = vector.shape_cast %35 : vector<1x256x128xbf16> to vector<256x128xbf16>
    %cst_26 = arith.constant dense<0.000000e+00> : vector<16x128xf32>
    %37 = tpu.matmul %34, %36, %cst_26 {dimension_numbers = #tpu.dot_dimension_numbers<[1], [0], [0], [1], [0, 0, 1, 1], [], []>} : vector<16x256xbf16>, vector<256x128xbf16>, vector<16x128xf32> -> vector<16x128xf32>
    %c3_27 = arith.constant 3 : index
    %c0_28 = arith.constant 0 : index
    %c0_29 = arith.constant 0 : index
    %38 = vector.load %arg5[%c3_27, %c0_28, %c0_29] : memref<7x1x128xf32, #tpu.memory_space<vmem>>, vector<1x1x128xf32>
    %39 = vector.shape_cast %38 : vector<1x1x128xf32> to vector<1x128xf32>
    %40 = vector.broadcast %39 : vector<1x128xf32> to vector<16x128xf32>
    %41 = arith.addf %37, %40 : vector<16x128xf32>
    %42 = arith.truncf %41 : vector<16x128xf32> to vector<16x128xbf16>
    %43 = vector.extract_strided_slice %6 {offsets = [0, 1024], sizes = [16, 256], strides = [1, 1]} : vector<16x1792xbf16> to vector<16x256xbf16>
    %c4 = arith.constant 4 : index
    %c0_30 = arith.constant 0 : index
    %c0_31 = arith.constant 0 : index
    %44 = vector.load %arg4[%c4, %c0_30, %c0_31] : memref<7x256x128xbf16, #tpu.memory_space<vmem>>, vector<1x256x128xbf16>
    %45 = vector.shape_cast %44 : vector<1x256x128xbf16> to vector<256x128xbf16>
    %cst_32 = arith.constant dense<0.000000e+00> : vector<16x128xf32>
    %46 = tpu.matmul %43, %45, %cst_32 {dimension_numbers = #tpu.dot_dimension_numbers<[1], [0], [0], [1], [0, 0, 1, 1], [], []>} : vector<16x256xbf16>, vector<256x128xbf16>, vector<16x128xf32> -> vector<16x128xf32>
    %c4_33 = arith.constant 4 : index
    %c0_34 = arith.constant 0 : index
    %c0_35 = arith.constant 0 : index
    %47 = vector.load %arg5[%c4_33, %c0_34, %c0_35] : memref<7x1x128xf32, #tpu.memory_space<vmem>>, vector<1x1x128xf32>
    %48 = vector.shape_cast %47 : vector<1x1x128xf32> to vector<1x128xf32>
    %49 = vector.broadcast %48 : vector<1x128xf32> to vector<16x128xf32>
    %50 = arith.addf %46, %49 : vector<16x128xf32>
    %51 = arith.truncf %50 : vector<16x128xf32> to vector<16x128xbf16>
    %52 = vector.extract_strided_slice %6 {offsets = [0, 1280], sizes = [16, 256], strides = [1, 1]} : vector<16x1792xbf16> to vector<16x256xbf16>
    %c5 = arith.constant 5 : index
    %c0_36 = arith.constant 0 : index
    %c0_37 = arith.constant 0 : index
    %53 = vector.load %arg4[%c5, %c0_36, %c0_37] : memref<7x256x128xbf16, #tpu.memory_space<vmem>>, vector<1x256x128xbf16>
    %54 = vector.shape_cast %53 : vector<1x256x128xbf16> to vector<256x128xbf16>
    %cst_38 = arith.constant dense<0.000000e+00> : vector<16x128xf32>
    %55 = tpu.matmul %52, %54, %cst_38 {dimension_numbers = #tpu.dot_dimension_numbers<[1], [0], [0], [1], [0, 0, 1, 1], [], []>} : vector<16x256xbf16>, vector<256x128xbf16>, vector<16x128xf32> -> vector<16x128xf32>
    %c5_39 = arith.constant 5 : index
    %c0_40 = arith.constant 0 : index
    %c0_41 = arith.constant 0 : index
    %56 = vector.load %arg5[%c5_39, %c0_40, %c0_41] : memref<7x1x128xf32, #tpu.memory_space<vmem>>, vector<1x1x128xf32>
    %57 = vector.shape_cast %56 : vector<1x1x128xf32> to vector<1x128xf32>
    %58 = vector.broadcast %57 : vector<1x128xf32> to vector<16x128xf32>
    %59 = arith.addf %55, %58 : vector<16x128xf32>
    %60 = arith.truncf %59 : vector<16x128xf32> to vector<16x128xbf16>
    %61 = vector.extract_strided_slice %6 {offsets = [0, 1536], sizes = [16, 256], strides = [1, 1]} : vector<16x1792xbf16> to vector<16x256xbf16>
    %c6 = arith.constant 6 : index
    %c0_42 = arith.constant 0 : index
    %c0_43 = arith.constant 0 : index
    %62 = vector.load %arg4[%c6, %c0_42, %c0_43] : memref<7x256x128xbf16, #tpu.memory_space<vmem>>, vector<1x256x128xbf16>
    %63 = vector.shape_cast %62 : vector<1x256x128xbf16> to vector<256x128xbf16>
    %cst_44 = arith.constant dense<0.000000e+00> : vector<16x128xf32>
    %64 = tpu.matmul %61, %63, %cst_44 {dimension_numbers = #tpu.dot_dimension_numbers<[1], [0], [0], [1], [0, 0, 1, 1], [], []>} : vector<16x256xbf16>, vector<256x128xbf16>, vector<16x128xf32> -> vector<16x128xf32>
    %c6_45 = arith.constant 6 : index
    %c0_46 = arith.constant 0 : index
    %c0_47 = arith.constant 0 : index
    %65 = vector.load %arg5[%c6_45, %c0_46, %c0_47] : memref<7x1x128xf32, #tpu.memory_space<vmem>>, vector<1x1x128xf32>
    %66 = vector.shape_cast %65 : vector<1x1x128xf32> to vector<1x128xf32>
    %67 = vector.broadcast %66 : vector<1x128xf32> to vector<16x128xf32>
    %68 = arith.addf %64, %67 : vector<16x128xf32>
    %69 = arith.truncf %68 : vector<16x128xf32> to vector<16x128xbf16>
    %70 = tpu.concatenate %15, %24, %33, %42, %51, %60, %69 in 1 : vector<16x128xbf16>, vector<16x128xbf16>, vector<16x128xbf16>, vector<16x128xbf16>, vector<16x128xbf16>, vector<16x128xbf16>, vector<16x128xbf16> -> vector<16x896xbf16>
    %c0_48 = arith.constant 0 : index
    %c0_49 = arith.constant 0 : index
    %71 = vector.load %arg6[%c0_48, %c0_49] : memref<896x128xbf16, #tpu.memory_space<vmem>>, vector<896x128xbf16>
    %cst_50 = arith.constant dense<0.000000e+00> : vector<16x128xf32>
    %72 = tpu.matmul %70, %71, %cst_50 {dimension_numbers = #tpu.dot_dimension_numbers<[1], [0], [0], [1], [0, 0, 1, 1], [], []>} : vector<16x896xbf16>, vector<896x128xbf16>, vector<16x128xf32> -> vector<16x128xf32>
    %c0_51 = arith.constant 0 : index
    %c0_52 = arith.constant 0 : index
    %73 = vector.load %arg7[%c0_51, %c0_52] : memref<1x128xf32, #tpu.memory_space<vmem>>, vector<1x128xf32>
    %74 = vector.broadcast %73 : vector<1x128xf32> to vector<16x128xf32>
    %75 = arith.addf %72, %74 : vector<16x128xf32>
    %cst_53 = arith.constant 0.000000e+00 : f32
    %76 = vector.broadcast %cst_53 : f32 to vector<16x128xf32>
    %77 = arith.subf %76, %75 : vector<16x128xf32>
    %78 = math.exp %77 : vector<16x128xf32>
    %cst_54 = arith.constant 1.000000e+00 : f32
    %79 = vector.broadcast %cst_54 : f32 to vector<16x128xf32>
    %80 = arith.addf %79, %78 : vector<16x128xf32>
    %81 = tpu.reciprocal %80 {approx = true} : vector<16x128xf32> -> vector<16x128xf32>
    %c0_55 = arith.constant 0 : index
    %c0_56 = arith.constant 0 : index
    %82 = vector.load %arg8[%c0_55, %c0_56] : memref<16x128xf32, #tpu.memory_space<vmem>>, vector<16x128xf32>
    tpu.vector_store %arg8[%c0_55, %c0_56], %81 {strides = array<i32>} : memref<16x128xf32, #tpu.memory_space<vmem>>, vector<16x128xf32>,
    return
  }
  func.func @transform_0(%arg0: i32) -> (i32, i32) {
    %c0_i32 = arith.constant 0 : i32
    %c0_i32_0 = arith.constant 0 : i32
    return %arg0, %c0_i32 : i32, i32
  }
  func.func @transform_1(%arg0: i32) -> (i32, i32) {
    %c0_i32 = arith.constant 0 : i32
    %c0_i32_0 = arith.constant 0 : i32
    %c0_i32_1 = arith.constant 0 : i32
    return %c0_i32, %c0_i32_0 : i32, i32
  }
  func.func @transform_2(%arg0: i32) -> (i32, i32) {
    %c0_i32 = arith.constant 0 : i32
    %c0_i32_0 = arith.constant 0 : i32
    %c0_i32_1 = arith.constant 0 : i32
    return %c0_i32, %c0_i32_0 : i32, i32
  }
  func.func @transform_3(%arg0: i32) -> (i32, i32, i32) {
    %c0_i32 = arith.constant 0 : i32
    %c0_i32_0 = arith.constant 0 : i32
    %c0_i32_1 = arith.constant 0 : i32
    %c0_i32_2 = arith.constant 0 : i32
    return %c0_i32, %c0_i32_0, %c0_i32_1 : i32, i32, i32
  }
  func.func @transform_4(%arg0: i32) -> (i32, i32, i32) {
    %c0_i32 = arith.constant 0 : i32
    %c0_i32_0 = arith.constant 0 : i32
    %c0_i32_1 = arith.constant 0 : i32
    %c0_i32_2 = arith.constant 0 : i32
    return %c0_i32, %c0_i32_0, %c0_i32_1 : i32, i32, i32
  }
  func.func @transform_5(%arg0: i32) -> (i32, i32) {
    %c0_i32 = arith.constant 0 : i32
    %c0_i32_0 = arith.constant 0 : i32
    %c0_i32_1 = arith.constant 0 : i32
    return %c0_i32, %c0_i32_0 : i32, i32
  }
  func.func @transform_6(%arg0: i32) -> (i32, i32) {
    %c0_i32 = arith.constant 0 : i32
    %c0_i32_0 = arith.constant 0 : i32
    %c0_i32_1 = arith.constant 0 : i32
    return %c0_i32, %c0_i32_0 : i32, i32
  }
  func.func @transform_7(%arg0: i32) -> (i32, i32) {
    %c0_i32 = arith.constant 0 : i32
    %c0_i32_0 = arith.constant 0 : i32
    return %arg0, %c0_i32 : i32, i32
  }
}

</mosaic_0001>

<bundles_post_ra>
// kernel: feature_classifier_forward.1
= control target key start
LH: loop header
LB: loop body
LE: loop exit
PB: predicated region body
PF: predicated region fallthrough
CT: control target
= control target key end

     0   :  { %12 = vsyncpa [#allocation3], 0  ;;  %s4163_s0 = inlined_call_operand.vmem [shape: bf16[16,128], index: 0, kind: input, shape index: {}]   ;;  %s4164_s1 = inlined_call_operand.hbm [shape: bf16[128,1792], index: 1, kind: input, shape index: {}]   ;;  %s4165_s2 = inlined_call_operand.vmem [shape: f32[1,1792], index: 2, kind: input, shape index: {}]   ;;  %s4166_s3 = inlined_call_operand.hbm [shape: bf16[7,256,128], index: 3, kind: input, shape index: {}]   ;;  %s4167_s4 = inlined_call_operand.vmem [shape: f32[7,1,128], index: 4, kind: input, shape index: {}]   ;;  %s4168_s5 = inlined_call_operand.hbm [shape: bf16[896,128], index: 5, kind: input, shape index: {}]   ;;  %s4169_s6 = inlined_call_operand.vmem [shape: f32[1,128], index: 6, kind: input, shape index: {}]   ;;  %s4170_s7 = inlined_call_operand.vmem [shape: f32[16,128], index: 7, kind: output, shape index: {}]  }
   0x1   :  { %13 = vsyncpa [#allocation5], 0  ;;  %s3988_s24 = smov [#allocation4]  }
   0x2   :  { %s35_s25 = sshll.u32 %s3988_s24, 4  ;;  %s36_s25 = int_to_ptr.vmem [resolvable:$true] %s35_s25 }
   0x3   :  { %s3932_s26 = scalar_lea.vmem %s36_s25, 14336  ;;  %p3937_p1 = scmp.lt.s32.totalorder %s36_s25, %s36_s25 }
   0x4   :  { %p3933_p0 = scmp.ne.s32.totalorder %s36_s25, %s3932_s26  ;;  %p3938_p2 = scmp.lt.s32.totalorder %s3932_s26, %s3932_s26 }
   0x6   :  { %p3939_p3 = por %p3938_p2, %p3937_p1 }
   0x8   :  { %p3940_p4 = pnand %p3939_p3, %p3933_p0 }
   0xa   :  { %3943 = shalt.err (!%p3940_p4)
}
   0xb   :  { %s3989_s27 = smov 64   ;;  %s3990_s28 = smov 4  }
   0xc   :  { %41 = dma.hbm_to_vmem [thread:$0]  %s4166_s3, 14336, %s36_s25, [#allocation5], %s3989_s27, %s3989_s27, %s3990_s28  }
   0xd   :  { %s3991_s8 = smov [#allocation2]  }
   0xe   :  { %s21_s9 = sshll.u32 %s3991_s8, 4  ;;  %s22_s9 = int_to_ptr.vmem [resolvable:$true] %s21_s9 }
   0xf   :  { %s3952_s10 = scalar_lea.vmem %s22_s9, 14336  ;;  %p3957_p6 = scmp.lt.s32.totalorder %s22_s9, %s22_s9 }
  0x10   :  { %p3953_p5 = scmp.ne.s32.totalorder %s22_s9, %s3952_s10  ;;  %p3958_p7 = scmp.lt.s32.totalorder %s3952_s10, %s3952_s10 }
  0x12   :  { %p3959_p8 = por %p3958_p7, %p3957_p6 }
  0x14   :  { %p3960_p9 = pnand %p3959_p8, %p3953_p5 }
  0x16   :  { %3963 = shalt.err (!%p3960_p9)
}
  0x17   :  { %s3992_s11 = smov 896   ;;  %s3993_s12 = smov 56  }
  0x18   :  { %27 = dma.hbm_to_vmem [thread:$0]  %s4164_s1, 14336, %s22_s9, [#allocation3], %s3992_s11, %s3992_s11, %s3993_s12  }
  0x19   :  { %s3994_s15 = smov [#allocation6]  }
  0x1a   :  { %s49_s16 = sshll.u32 %s3994_s15, 4  ;;  %s50_s16 = int_to_ptr.vmem [resolvable:$true] %s49_s16 }
  0x1b   :  { %s3972_s3 = scalar_lea.vmem %s50_s16, 7168  ;;  %p3977_p11 = scmp.lt.s32.totalorder %s50_s16, %s50_s16 }
  0x1c   :  { %p3973_p10 = scmp.ne.s32.totalorder %s50_s16, %s3972_s3  ;;  %p3978_p12 = scmp.lt.s32.totalorder %s3972_s3, %s3972_s3 }
  0x1e   :  { %p3979_p13 = por %p3978_p12, %p3977_p11 }
  0x20   :  { %p3980_p0 = pnand %p3979_p13, %p3973_p10 }
  0x22   :  { %3983 = shalt.err (!%p3980_p0)
}
  0x23   :  { %55 = dma.hbm_to_vmem [thread:$0]  %s4168_s5, 7168, %s50_s16, [#allocation5], %s3989_s27, %s3989_s27, %s3990_s28  }
  0x24   :  { %3984 = dma.done.wait [#allocation3], 14336  }
  0x25   :  { %3985 = vsyncadd [#allocation3], 4294952960 }
  0x26   :  { %3986 = dma.done.wait [#allocation5], 21504  }
  0x27   :  { %3987 = vsyncadd [#allocation5], 4294945792  ;;  %v3995_v0 = vmov 0   ;;  %v3579_v1 = vld [vmem:[#allocation2 + $0x314] ss:$56 sps:$4 sm:$0xff]   ;;  %v4052_v35 = vld [vmem:[%s4163_s0] sm:$0xff]  }
  0x28   :  { %854 = vmatprep.mubr.bf16.mxu0 %v3995_v0  ;;  %897 = vmatprep.mubr.bf16.mxu1 %v3995_v0  ;;  %v3581_v2 = vld [vmem:[#allocation2 + $0x31c] ss:$56 sps:$4 sm:$0xff]   ;;  %v3583_v3 = vld [vmem:[#allocation2 + $0x310] ss:$56 sps:$4 sm:$0xff]   ;;  %v3587_v6 = vld [vmem:[#allocation2 + $0x2ac] ss:$56 sps:$4 sm:$0xff]  }
  0x29   :  { %822 = vmatprep.subr.bf16.mxu0 %v3579_v1  ;;  %v3584_v4 = vld [vmem:[#allocation2 + $0x318] ss:$56 sps:$4 sm:$0xff]   ;;  %865 = vmatprep.subr.bf16.mxu1 %v3581_v2  ;;  %v3585_v5 = vld [vmem:[#allocation2 + $0x2a4] ss:$56 sps:$4 sm:$0xff]   ;;  %v3590_v8 = vld [vmem:[#allocation2 + $0x2a8] ss:$56 sps:$4 sm:$0xff]  }
  0x2a   :  { %823 = vmatpush1.bf16.msra.mxu0 %v3583_v3  ;;  %866 = vmatpush1.bf16.msra.mxu1 %v3584_v4  ;;  %v3589_v7 = vld [vmem:[#allocation2 + $0x2a0] ss:$56 sps:$4 sm:$0xff]   ;;  %v3591_v9 = vld [vmem:[#allocation2 + $0x234] ss:$56 sps:$4 sm:$0xff]   ;;  %v3595_v11 = vld [vmem:[#allocation2 + $0x230] ss:$56 sps:$4 sm:$0xff]  }
  0x2b   :  { %824 = vmatprep.subr.bf16.mxu0 %v3585_v5  ;;  %867 = vmatprep.subr.bf16.mxu1 %v3587_v6  ;;  %v3593_v10 = vld [vmem:[#allocation2 + $0x23c] ss:$56 sps:$4 sm:$0xff]   ;;  %v3596_v12 = vld [vmem:[#allocation2 + $0x238] ss:$56 sps:$4 sm:$0xff]   ;;  %v3599_v14 = vld [vmem:[#allocation2 + $0x1cc] ss:$56 sps:$4 sm:$0xff]  }
  0x2c   :  { %v3597_v13 = vld [vmem:[#allocation2 + $0x1c4] ss:$56 sps:$4 sm:$0xff]   ;;  %v3601_v15 = vld [vmem:[#allocation2 + $0x1c0] ss:$56 sps:$4 sm:$0xff]   ;;  %v3603_v17 = vld [vmem:[#allocation2 + $0x154] ss:$56 sps:$4 sm:$0xff]  }
  0x2d   :  { %v3602_v16 = vld [vmem:[#allocation2 + $0x1c8] ss:$56 sps:$4 sm:$0xff]   ;;  %v3605_v18 = vld [vmem:[#allocation2 + $0x15c] ss:$56 sps:$4 sm:$0xff]   ;;  %v3608_v20 = vld [vmem:[#allocation2 + $0x158] ss:$56 sps:$4 sm:$0xff]  }
  0x2e   :  { %825 = vmatpush1.bf16.msra.mxu0 %v3589_v7  ;;  %868 = vmatpush1.bf16.msra.mxu1 %v3590_v8  ;;  %v3607_v19 = vld [vmem:[#allocation2 + $0x150] ss:$56 sps:$4 sm:$0xff]   ;;  %v3609_v21 = vld [vmem:[#allocation2 + $0xe4] ss:$56 sps:$4 sm:$0xff]   ;;  %v3613_v23 = vld [vmem:[#allocation2 + $0xe0] ss:$56 sps:$4 sm:$0xff]  }
  0x2f   :  { %826 = vmatprep.subr.bf16.mxu0 %v3591_v9  ;;  %869 = vmatprep.subr.bf16.mxu1 %v3593_v10  ;;  %v3611_v22 = vld [vmem:[#allocation2 + $0xec] ss:$56 sps:$4 sm:$0xff]   ;;  %v3614_v24 = vld [vmem:[#allocation2 + $0xe8] ss:$56 sps:$4 sm:$0xff]   ;;  %v3617_v26 = vld [vmem:[#allocation2 + $0x7c] ss:$56 sps:$4 sm:$0xff]  }
  0x30   :  { %v3615_v25 = vld [vmem:[#allocation2 + $0x74] ss:$56 sps:$4 sm:$0xff]   ;;  %v3619_v27 = vld [vmem:[#allocation2 + $0x70] ss:$56 sps:$4 sm:$0xff]   ;;  %v3621_v29 = vld [vmem:[#allocation2 + $0x4] ss:$56 sps:$4 sm:$0xff]  }
  0x31   :  { %v3620_v28 = vld [vmem:[#allocation2 + $0x78] ss:$56 sps:$4 sm:$0xff]   ;;  %v3623_v30 = vld [vmem:[#allocation2 + $0xc] ss:$56 sps:$4 sm:$0xff]   ;;  %v3626_v32 = vld [vmem:[#allocation2 + $0x8] ss:$56 sps:$4 sm:$0xff]  }
  0x32   :  { %827 = vmatpush1.bf16.msra.mxu0 %v3595_v11  ;;  %870 = vmatpush1.bf16.msra.mxu1 %v3596_v12  ;;  %v3625_v31 = vld [vmem:[#allocation2] ss:$56 sps:$4 sm:$0xff]   ;;  %v3630_v33 = vld [vmem:[#allocation2 + $0x324] ss:$56 sps:$4 sm:$0xff]   ;;  %v3636_v38 = vld [vmem:[#allocation2 + $0x2b4] ss:$56 sps:$4 sm:$0xff]  }
  0x33   :  { %828 = vmatprep.subr.bf16.mxu0 %v3597_v13  ;;  %871 = vmatprep.subr.bf16.mxu1 %v3599_v14  ;;  %v3633_v34 = vld [vmem:[#allocation2 + $0x32c] ss:$56 sps:$4 sm:$0xff]   ;;  %v3628_v36 = vld [vmem:[#allocation2 + $0x320] ss:$56 sps:$4 sm:$0xff]   ;;  %v3639_v39 = vld [vmem:[#allocation2 + $0x2bc] ss:$56 sps:$4 sm:$0xff]  }
  0x34   :  { %v3631_v37 = vld [vmem:[#allocation2 + $0x328] ss:$56 sps:$4 sm:$0xff]   ;;  %v3637_v41 = vld [vmem:[#allocation2 + $0x2b8] ss:$56 sps:$4 sm:$0xff]   ;;  %v3642_v42 = vld [vmem:[#allocation2 + $0x244] ss:$56 sps:$4 sm:$0xff]  }
  0x35   :  { %v3634_v40 = vld [vmem:[#allocation2 + $0x2b0] ss:$56 sps:$4 sm:$0xff]   ;;  %v3645_v43 = vld [vmem:[#allocation2 + $0x24c] ss:$56 sps:$4 sm:$0xff]   ;;  %v3640_v44 = vld [vmem:[#allocation2 + $0x240] ss:$56 sps:$4 sm:$0xff]  }
  0x36   :  { %829 = vmatpush1.bf16.msra.mxu0 %v3601_v15  ;;  %872 = vmatpush1.bf16.msra.mxu1 %v3602_v16  ;;  %v3643_v45 = vld [vmem:[#allocation2 + $0x248] ss:$56 sps:$4 sm:$0xff]   ;;  %v3648_v46 = vld [vmem:[#allocation2 + $0x1d4] ss:$56 sps:$4 sm:$0xff]   ;;  %v3649_v49 = vld [vmem:[#allocation2 + $0x1d8] ss:$56 sps:$4 sm:$0xff]  }
  0x37   :  { %830 = vmatprep.subr.bf16.mxu0 %v3603_v17  ;;  %873 = vmatprep.subr.bf16.mxu1 %v3605_v18  ;;  %v3651_v47 = vld [vmem:[#allocation2 + $0x1dc] ss:$56 sps:$4 sm:$0xff]   ;;  %v3646_v48 = vld [vmem:[#allocation2 + $0x1d0] ss:$56 sps:$4 sm:$0xff]   ;;  %v3657_v51 = vld [vmem:[#allocation2 + $0x16c] ss:$56 sps:$4 sm:$0xff]  }
  0x38   :  { %v3654_v50 = vld [vmem:[#allocation2 + $0x164] ss:$56 sps:$4 sm:$0xff]   ;;  %v3652_v52 = vld [vmem:[#allocation2 + $0x160] ss:$56 sps:$4 sm:$0xff]   ;;  %v3660_v54 = vld [vmem:[#allocation2 + $0xf4] ss:$56 sps:$4 sm:$0xff]  }
  0x39   :  { %v3655_v53 = vld [vmem:[#allocation2 + $0x168] ss:$56 sps:$4 sm:$0xff]   ;;  %v3663_v55 = vld [vmem:[#allocation2 + $0xfc] ss:$56 sps:$4 sm:$0xff]   ;;  %v3661_v57 = vld [vmem:[#allocation2 + $0xf8] ss:$56 sps:$4 sm:$0xff]  }
  0x3a   :  { %831 = vmatpush1.bf16.msra.mxu0 %v3607_v19  ;;  %874 = vmatpush1.bf16.msra.mxu1 %v3608_v20  ;;  %v3658_v56 = vld [vmem:[#allocation2 + $0xf0] ss:$56 sps:$4 sm:$0xff]   ;;  %v3666_v58 = vld [vmem:[#allocation2 + $0x84] ss:$56 sps:$4 sm:$0xff]   ;;  %v3664_v60 = vld [vmem:[#allocation2 + $0x80] ss:$56 sps:$4 sm:$0xff]  }
  0x3b   :  { %832 = vmatprep.subr.bf16.mxu0 %v3609_v21  ;;  %875 = vmatprep.subr.bf16.mxu1 %v3611_v22  ;;  %v3669_v59 = vld [vmem:[#allocation2 + $0x8c] ss:$56 sps:$4 sm:$0xff]   ;;  %v3667_v61 = vld [vmem:[#allocation2 + $0x88] ss:$56 sps:$4 sm:$0xff]   ;;  %v3675_v63 = vld [vmem:[#allocation2 + $0x1c] ss:$56 sps:$4 sm:$0xff]  }
  0x3c   :  { %v3672_v62 = vld [vmem:[#allocation2 + $0x14] ss:$56 sps:$4 sm:$0xff]   ;;  %v3670_v1 = vld [vmem:[#allocation2 + $0x10] ss:$56 sps:$4 sm:$0xff]   ;;  %v3684_v7 = vld [vmem:[#allocation2 + $0x2c4] ss:$56 sps:$4 sm:$0xff]  }
  0x3d   :  { %v3673_v2 = vld [vmem:[#allocation2 + $0x18] ss:$56 sps:$4 sm:$0xff]   ;;  %v3678_v3 = vld [vmem:[#allocation2 + $0x334] ss:$56 sps:$4 sm:$0xff]   ;;  %v3685_v10 = vld [vmem:[#allocation2 + $0x2c8] ss:$56 sps:$4 sm:$0xff]  }
  0x3e   :  { %833 = vmatpush1.bf16.msra.mxu0 %v3613_v23  ;;  %876 = vmatpush1.bf16.msra.mxu1 %v3614_v24  ;;  %v3681_v4 = vld [vmem:[#allocation2 + $0x33c] ss:$56 sps:$4 sm:$0xff]   ;;  %v3676_v5 = vld [vmem:[#allocation2 + $0x330] ss:$56 sps:$4 sm:$0xff]   ;;  %v3687_v8 = vld [vmem:[#allocation2 + $0x2cc] ss:$56 sps:$4 sm:$0xff]  }
  0x3f   :  { %834 = vmatprep.subr.bf16.mxu0 %v3615_v25  ;;  %877 = vmatprep.subr.bf16.mxu1 %v3617_v26  ;;  %v3679_v6 = vld [vmem:[#allocation2 + $0x338] ss:$56 sps:$4 sm:$0xff]   ;;  %v3690_v11 = vld [vmem:[#allocation2 + $0x254] ss:$56 sps:$4 sm:$0xff]   ;;  %v3696_v15 = vld [vmem:[#allocation2 + $0x1e4] ss:$56 sps:$4 sm:$0xff]  }
  0x40   :  { %v3682_v9 = vld [vmem:[#allocation2 + $0x2c0] ss:$56 sps:$4 sm:$0xff]   ;;  %v3693_v12 = vld [vmem:[#allocation2 + $0x25c] ss:$56 sps:$4 sm:$0xff]   ;;  %v3688_v13 = vld [vmem:[#allocation2 + $0x250] ss:$56 sps:$4 sm:$0xff]  }
  0x41   :  { %v3691_v14 = vld [vmem:[#allocation2 + $0x258] ss:$56 sps:$4 sm:$0xff]   ;;  %v3699_v16 = vld [vmem:[#allocation2 + $0x1ec] ss:$56 sps:$4 sm:$0xff]   ;;  %v3697_v18 = vld [vmem:[#allocation2 + $0x1e8] ss:$56 sps:$4 sm:$0xff]  }
  0x42   :  { %835 = vmatpush1.bf16.msra.mxu0 %v3619_v27  ;;  %878 = vmatpush1.bf16.msra.mxu1 %v3620_v28  ;;  %v3694_v17 = vld [vmem:[#allocation2 + $0x1e0] ss:$56 sps:$4 sm:$0xff]   ;;  %v3702_v19 = vld [vmem:[#allocation2 + $0x174] ss:$56 sps:$4 sm:$0xff]   ;;  %v3700_v21 = vld [vmem:[#allocation2 + $0x170] ss:$56 sps:$4 sm:$0xff]  }
  0x43   :  { %836 = vmatprep.subr.bf16.mxu0 %v3621_v29  ;;  %879 = vmatprep.subr.bf16.mxu1 %v3623_v30  ;;  %v3705_v20 = vld [vmem:[#allocation2 + $0x17c] ss:$56 sps:$4 sm:$0xff]   ;;  %v3703_v22 = vld [vmem:[#allocation2 + $0x178] ss:$56 sps:$4 sm:$0xff]   ;;  %v3711_v24 = vld [vmem:[#allocation2 + $0x10c] ss:$56 sps:$4 sm:$0xff]  }
  0x44   :  { %v3708_v23 = vld [vmem:[#allocation2 + $0x104] ss:$56 sps:$4 sm:$0xff]   ;;  %v3706_v25 = vld [vmem:[#allocation2 + $0x100] ss:$56 sps:$4 sm:$0xff]   ;;  %v3714_v27 = vld [vmem:[#allocation2 + $0x94] ss:$56 sps:$4 sm:$0xff]  }
  0x45   :  { %v3709_v26 = vld [vmem:[#allocation2 + $0x108] ss:$56 sps:$4 sm:$0xff]   ;;  %v3717_v28 = vld [vmem:[#allocation2 + $0x9c] ss:$56 sps:$4 sm:$0xff]   ;;  %v3715_v30 = vld [vmem:[#allocation2 + $0x98] ss:$56 sps:$4 sm:$0xff]  }
  0x46   :  { %837 = vmatpush1.bf16.msra.mxu0 %v3625_v31  ;;  %880 = vmatpush1.bf16.msra.mxu1 %v3626_v32  ;;  %v3712_v29 = vld [vmem:[#allocation2 + $0x90] ss:$56 sps:$4 sm:$0xff]   ;;  %v3720_v31 = vld [vmem:[#allocation2 + $0x24] ss:$56 sps:$4 sm:$0xff]   ;;  %vm3997_vm0 = vmmov 0  }
  0x47   :  { %908 = vmatprep.subr.bf16.mxu0 %v3630_v33  ;;  %951 = vmatprep.subr.bf16.mxu1 %v3633_v34  ;;  %v3723_v32 = vld [vmem:[#allocation2 + $0x2c] ss:$56 sps:$4 sm:$0xff]   ;;  %v3718_v33 = vld [vmem:[#allocation2 + $0x20] ss:$56 sps:$4 sm:$0xff]  }
  0x48   :  { %v3721_v34 = vld [vmem:[#allocation2 + $0x28] ss:$56 sps:$4 sm:$0xff]  }
  0x49   :  { %855 = vmatmul.mubr.bf16.vlgmr.msra.gmra.mxu0 %v4052_v35  ;;  %898 = vmatmul.mubr.bf16.vlgmr.msra.gmra.mxu1 %v4052_v35 }
  0x4a   :  { %909 = vmatpush1.bf16.msra.mxu0 %v3628_v36  ;;  %952 = vmatpush1.bf16.msra.mxu1 %v3631_v37  ;;  %v3726_v36 = vld [vmem:[#allocation2 + $0x344] ss:$56 sps:$4 sm:$0xff]  }
  0x4b   :  { %910 = vmatprep.subr.bf16.mxu0 %v3636_v38  ;;  %953 = vmatprep.subr.bf16.mxu1 %v3639_v39  ;;  %v3748_v37 = vld [vmem:[#allocation4 + $0x78] sm:$0xff]   ;;  %v3729_v39 = vld [vmem:[#allocation2 + $0x2d4] ss:$56 sps:$4 sm:$0xff]  }
  0x4c   :  { %940 = vmatprep.mubr.bf16.mxu0 %v3995_v0  ;;  %983 = vmatprep.mubr.bf16.mxu1 %v3995_v0  ;;  %v3724_v38 = vld [vmem:[#allocation2 + $0x340] ss:$56 sps:$4 sm:$0xff]  }
  0x4e   :  { %911 = vmatpush1.bf16.msra.mxu0 %v3634_v40  ;;  %954 = vmatpush1.bf16.msra.mxu1 %v3637_v41  ;;  %v3750_v40 = vld [vmem:[#allocation4 + $0x38] sm:$0xff]   ;;  %v3752_v41 = vld [vmem:[#allocation4 + $0x70] sm:$0xff]  }
  0x4f   :  { %912 = vmatprep.subr.bf16.mxu0 %v3642_v42  ;;  %955 = vmatprep.subr.bf16.mxu1 %v3645_v43  ;;  %v3727_v42 = vld [vmem:[#allocation2 + $0x2d0] ss:$56 sps:$4 sm:$0xff]   ;;  %v3732_v43 = vld [vmem:[#allocation2 + $0x264] ss:$56 sps:$4 sm:$0xff]  }
  0x52   :  { %913 = vmatpush1.bf16.msra.mxu0 %v3640_v44  ;;  %956 = vmatpush1.bf16.msra.mxu1 %v3643_v45  ;;  %v3754_v44 = vld [vmem:[#allocation4 + $0x30] sm:$0xff]   ;;  %v3756_v45 = vld [vmem:[#allocation4 + $0x68] sm:$0xff]  }
  0x53   :  { %914 = vmatprep.subr.bf16.mxu0 %v3648_v46  ;;  %957 = vmatprep.subr.bf16.mxu1 %v3651_v47  ;;  %v3730_v46 = vld [vmem:[#allocation2 + $0x260] ss:$56 sps:$4 sm:$0xff]   ;;  %v3735_v47 = vld [vmem:[#allocation2 + $0x1f4] ss:$56 sps:$4 sm:$0xff]  }
  0x56   :  { %915 = vmatpush1.bf16.msra.mxu0 %v3646_v48  ;;  %958 = vmatpush1.bf16.msra.mxu1 %v3649_v49  ;;  %v3758_v48 = vld [vmem:[#allocation4 + $0x28] sm:$0xff]   ;;  %v3760_v49 = vld [vmem:[#allocation4 + $0x60] sm:$0xff]  }
  0x57   :  { %916 = vmatprep.subr.bf16.mxu0 %v3654_v50  ;;  %959 = vmatprep.subr.bf16.mxu1 %v3657_v51  ;;  %v3733_v50 = vld [vmem:[#allocation2 + $0x1f0] ss:$56 sps:$4 sm:$0xff]   ;;  %v3738_v51 = vld [vmem:[#allocation2 + $0x184] ss:$56 sps:$4 sm:$0xff]  }
  0x5a   :  { %917 = vmatpush1.bf16.msra.mxu0 %v3652_v52  ;;  %960 = vmatpush1.bf16.msra.mxu1 %v3655_v53  ;;  %v3762_v52 = vld [vmem:[#allocation4 + $0x20] sm:$0xff]  }
  0x5b   :  { %918 = vmatprep.subr.bf16.mxu0 %v3660_v54  ;;  %961 = vmatprep.subr.bf16.mxu1 %v3663_v55  ;;  %v3736_v53 = vld [vmem:[#allocation2 + $0x180] ss:$56 sps:$4 sm:$0xff]   ;;  %v3741_v54 = vld [vmem:[#allocation2 + $0x114] ss:$56 sps:$4 sm:$0xff]  }
  0x5c   :  { %v3766_v55 = vld [vmem:[#allocation4 + $0x18] sm:$0xff]  }
  0x5e   :  { %919 = vmatpush1.bf16.msra.mxu0 %v3658_v56  ;;  %962 = vmatpush1.bf16.msra.mxu1 %v3661_v57  ;;  %v3768_v56 = vld [vmem:[#allocation4 + $0x50] sm:$0xff]  }
  0x5f   :  { %920 = vmatprep.subr.bf16.mxu0 %v3666_v58  ;;  %963 = vmatprep.subr.bf16.mxu1 %v3669_v59  ;;  %v3739_v57 = vld [vmem:[#allocation2 + $0x110] ss:$56 sps:$4 sm:$0xff]   ;;  %v3744_v58 = vld [vmem:[#allocation2 + $0xa4] ss:$56 sps:$4 sm:$0xff]  }
  0x60   :  { %v3770_v59 = vld [vmem:[#allocation4 + $0x10] sm:$0xff]  }
  0x62   :  { %921 = vmatpush1.bf16.msra.mxu0 %v3664_v60  ;;  %964 = vmatpush1.bf16.msra.mxu1 %v3667_v61  ;;  %v3772_v60 = vld [vmem:[#allocation4 + $0x48] sm:$0xff]   ;;  %v3742_v61 = vld [vmem:[#allocation2 + $0xa0] ss:$56 sps:$4 sm:$0xff]  }
  0x63   :  { %922 = vmatprep.subr.bf16.mxu0 %v3672_v62  ;;  %965 = vmatprep.subr.bf16.mxu1 %v3675_v63  ;;  %v3747_v62 = vld [vmem:[#allocation2 + $0x34] ss:$56 sps:$4 sm:$0xff]  }
  0x64   :  { %v3774_v63 = vld [vmem:[#allocation4 + $0x8] sm:$0xff]  }
  0x66   :  { %923 = vmatpush1.bf16.msra.mxu0 %v3670_v1  ;;  %966 = vmatpush1.bf16.msra.mxu1 %v3673_v2  ;;  %v3776_v1 = vld [vmem:[#allocation4 + $0x40] sm:$0xff]   ;;  %v3745_v2 = vld [vmem:[#allocation2 + $0x30] ss:$56 sps:$4 sm:$0xff]  }
  0x67   :  { %994 = vmatprep.subr.bf16.mxu0 %v3678_v3  ;;  %1037 = vmatprep.subr.bf16.mxu1 %v3681_v4  ;;  %v3749_v3 = vld [vmem:[#allocation4 + $0xf8] sm:$0xff]   ;;  %v3778_v4 = vld [vmem:[#allocation4] sm:$0xff]  }
  0x69   :  { %941 = vmatmul.mubr.bf16.vlgmr.msra.gmra.mxu0 %v4052_v35  ;;  %984 = vmatmul.mubr.bf16.vlgmr.msra.gmra.mxu1 %v4052_v35 }
  0x6a   :  { %995 = vmatpush1.bf16.msra.mxu0 %v3676_v5  ;;  %1038 = vmatpush1.bf16.msra.mxu1 %v3679_v6  ;;  %v3780_v5 = vld [vmem:[#allocation4 + $0x178] sm:$0xff]  }
  0x6b   :  { %996 = vmatprep.subr.bf16.mxu0 %v3684_v7  ;;  %1039 = vmatprep.subr.bf16.mxu1 %v3687_v8  ;;  %v3751_v6 = vld [vmem:[#allocation4 + $0xb8] sm:$0xff]   ;;  %v3753_v7 = vld [vmem:[#allocation4 + $0xf0] sm:$0xff]  }
  0x6c   :  { %1026 = vmatprep.mubr.bf16.mxu0 %v3995_v0  ;;  %1069 = vmatprep.mubr.bf16.mxu1 %v3995_v0  ;;  %v3755_v8 = vld [vmem:[#allocation4 + $0xb0] sm:$0xff]  }
  0x6e   :  { %997 = vmatpush1.bf16.msra.mxu0 %v3682_v9  ;;  %1040 = vmatpush1.bf16.msra.mxu1 %v3685_v10  ;;  %v3757_v9 = vld [vmem:[#allocation4 + $0xe8] sm:$0xff]  }
  0x6f   :  { %998 = vmatprep.subr.bf16.mxu0 %v3690_v11  ;;  %1041 = vmatprep.subr.bf16.mxu1 %v3693_v12  ;;  %v3759_v10 = vld [vmem:[#allocation4 + $0xa8] sm:$0xff]   ;;  %v3761_v11 = vld [vmem:[#allocation4 + $0xe0] sm:$0xff]  }
  0x70   :  { %v3763_v12 = vld [vmem:[#allocation4 + $0xa0] sm:$0xff]  }
  0x72   :  { %999 = vmatpush1.bf16.msra.mxu0 %v3688_v13  ;;  %1042 = vmatpush1.bf16.msra.mxu1 %v3691_v14  ;;  %v3765_v13 = vld [vmem:[#allocation4 + $0xd8] sm:$0xff]  }
  0x73   :  { %1000 = vmatprep.subr.bf16.mxu0 %v3696_v15  ;;  %1043 = vmatprep.subr.bf16.mxu1 %v3699_v16  ;;  %v3767_v14 = vld [vmem:[#allocation4 + $0x98] sm:$0xff]   ;;  %v3769_v15 = vld [vmem:[#allocation4 + $0xd0] sm:$0xff]  }
  0x74   :  { %v3771_v16 = vld [vmem:[#allocation4 + $0x90] sm:$0xff]  }
  0x76   :  { %1001 = vmatpush1.bf16.msra.mxu0 %v3694_v17  ;;  %1044 = vmatpush1.bf16.msra.mxu1 %v3697_v18  ;;  %v3775_v17 = vld [vmem:[#allocation4 + $0x88] sm:$0xff]   ;;  %v3777_v18 = vld [vmem:[#allocation4 + $0xc0] sm:$0xff]  }
  0x77   :  { %1002 = vmatprep.subr.bf16.mxu0 %v3702_v19  ;;  %1045 = vmatprep.subr.bf16.mxu1 %v3705_v20  ;;  %v3779_v19 = vld [vmem:[#allocation4 + $0x80] sm:$0xff]   ;;  %v3781_v20 = vld [vmem:[#allocation4 + $0x1f8] sm:$0xff]  }
  0x7a   :  { %1003 = vmatpush1.bf16.msra.mxu0 %v3700_v21  ;;  %1046 = vmatpush1.bf16.msra.mxu1 %v3703_v22  ;;  %v186_v21 = vlaneseq }
  0x7b   :  { %1004 = vmatprep.subr.bf16.mxu0 %v3708_v23  ;;  %1047 = vmatprep.subr.bf16.mxu1 %v3711_v24 }
  0x7c   :  { %v4066_v22 = vshrl.u32 %v186_v21, 7  ;;  %v3807_v21 = vld [vmem:[#allocation4 + $0x188] sm:$0xff]  }
  0x7e   :  { %1005 = vmatpush1.bf16.msra.mxu0 %v3706_v25  ;;  %1048 = vmatpush1.bf16.msra.mxu1 %v3709_v26  ;;  %v188_v23 = vsub.s32 0, %v4066_v22  ;;  %v192_v24 = vsub.s32 1, %v4066_v22  ;;  %v196_v25 = vsub.s32 2, %v4066_v22  ;;  %v200_v26 = vsub.s32 3, %v4066_v22 }
  0x7f   :  { %1006 = vmatprep.subr.bf16.mxu0 %v3714_v27  ;;  %1049 = vmatprep.subr.bf16.mxu1 %v3717_v28  ;;  %v4075_v27 = vld [vmem:[%s4165_s2] sm:$0xff] }
  0x82   :  { %1007 = vmatpush1.bf16.msra.mxu0 %v3712_v29  ;;  %1050 = vmatpush1.bf16.msra.mxu1 %v3715_v30  ;;  %v197_v29 = vrot.slane %v4075_v27, %v196_v25 }
  0x83   :  { %1008 = vmatprep.subr.bf16.mxu0 %v3720_v31  ;;  %1051 = vmatprep.subr.bf16.mxu1 %v3723_v32  ;;  %v201_v31 = vrot.slane %v4075_v27, %v200_v26 }
  0x86   :  { %1009 = vmatpush1.bf16.msra.mxu0 %v3718_v33  ;;  %1052 = vmatpush1.bf16.msra.mxu1 %v3721_v34  ;;  %v193_v34 = vrot.slane %v4075_v27, %v192_v24 }
  0x87   :  { %1080 = vmatprep.subr.bf16.mxu0 %v3726_v36  ;;  %3320 = vmatprep.subr.bf16.mxu1 %v3748_v37  ;;  %v189_v36 = vrot.slane %v4075_v27, %v188_v23 }
  0x89   :  { %1027 = vmatmul.mubr.bf16.vlgmr.msra.gmra.mxu0 %v4052_v35  ;;  %1070 = vmatmul.mubr.bf16.vlgmr.msra.gmra.mxu1 %v4052_v35 }
  0x8a   :  { %1081 = vmatpush1.bf16.msra.mxu0 %v3724_v38  ;;  %1112 = vmatprep.mubr.bf16.mxu0 %v3995_v0  ;;  %v3764_v0 = vld [vmem:[#allocation4 + $0x58] sm:$0xff]  }
  0x8b   :  { %1082 = vmatprep.subr.bf16.mxu0 %v3729_v39  ;;  %3321 = vmatpush3.bf16.msra.mxu1 %v3750_v40 }
  0x8c   :  { %3322 = vmatprep.subr.bf16.mxu1 %v3752_v41 }
  0x8e   :  { %1083 = vmatpush1.bf16.msra.mxu0 %v3727_v42 }
  0x8f   :  { %1084 = vmatprep.subr.bf16.mxu0 %v3732_v43  ;;  %3323 = vmatpush3.bf16.msra.mxu1 %v3754_v44 }
  0x90   :  { %3324 = vmatprep.subr.bf16.mxu1 %v3756_v45 }
  0x92   :  { %1085 = vmatpush1.bf16.msra.mxu0 %v3730_v46 }
  0x93   :  { %1086 = vmatprep.subr.bf16.mxu0 %v3735_v47  ;;  %3325 = vmatpush3.bf16.msra.mxu1 %v3758_v48 }
  0x94   :  { %3326 = vmatprep.subr.bf16.mxu1 %v3760_v49 }
  0x96   :  { %1087 = vmatpush1.bf16.msra.mxu0 %v3733_v50 }
  0x97   :  { %1088 = vmatprep.subr.bf16.mxu0 %v3738_v51  ;;  %3327 = vmatpush3.bf16.msra.mxu1 %v3762_v52  ;;  %v3782_v52 = vld [vmem:[#allocation4 + $0x138] sm:$0xff]  }
  0x98   :  { %3328 = vmatprep.subr.bf16.mxu1 %v3764_v0  ;;  %v3783_v0 = vld [vmem:[#allocation4 + $0x1b8] sm:$0xff]  }
  0x9a   :  { %1089 = vmatpush1.bf16.msra.mxu0 %v3736_v53 }
  0x9b   :  { %1090 = vmatprep.subr.bf16.mxu0 %v3741_v54  ;;  %3329 = vmatpush3.bf16.msra.mxu1 %v3766_v55  ;;  %v3784_v54 = vld [vmem:[#allocation4 + $0x170] sm:$0xff]  }
  0x9c   :  { %3330 = vmatprep.subr.bf16.mxu1 %v3768_v56  ;;  %v3785_v55 = vld [vmem:[#allocation4 + $0x1f0] sm:$0xff]  }
  0x9d   :  { %v3786_v56 = vld [vmem:[#allocation4 + $0x130] sm:$0xff]  }
  0x9e   :  { %1091 = vmatpush1.bf16.msra.mxu0 %v3739_v57  ;;  %v3787_v57 = vld [vmem:[#allocation4 + $0x1b0] sm:$0xff]  }
  0x9f   :  { %1092 = vmatprep.subr.bf16.mxu0 %v3744_v58  ;;  %3331 = vmatpush3.bf16.msra.mxu1 %v3770_v59  ;;  %v3788_v58 = vld [vmem:[#allocation4 + $0x168] sm:$0xff]  }
  0xa0   :  { %3332 = vmatprep.subr.bf16.mxu1 %v3772_v60  ;;  %v3789_v59 = vld [vmem:[#allocation4 + $0x1e8] sm:$0xff]  }
  0xa1   :  { %v3790_v60 = vld [vmem:[#allocation4 + $0x128] sm:$0xff]  }
  0xa2   :  { %1093 = vmatpush1.bf16.msra.mxu0 %v3742_v61  ;;  %v3791_v61 = vld [vmem:[#allocation4 + $0x1a8] sm:$0xff]  }
  0xa3   :  { %1094 = vmatprep.subr.bf16.mxu0 %v3747_v62  ;;  %3333 = vmatpush3.bf16.msra.mxu1 %v3774_v63  ;;  %v3792_v62 = vld [vmem:[#allocation4 + $0x160] sm:$0xff]  }
  0xa4   :  { %3334 = vmatprep.subr.bf16.mxu1 %v3776_v1  ;;  %v3793_v63 = vld [vmem:[#allocation4 + $0x1e0] sm:$0xff]  }
  0xa5   :  { %v3794_v1 = vld [vmem:[#allocation4 + $0x120] sm:$0xff]  }
  0xa6   :  { %1095 = vmatpush1.bf16.msra.mxu0 %v3745_v2  ;;  %v3795_v2 = vld [vmem:[#allocation4 + $0x1a0] sm:$0xff]  }
  0xa7   :  { %3342 = vmatprep.subr.bf16.mxu0 %v3749_v3  ;;  %3335 = vmatpush3.bf16.msra.mxu1 %v3778_v4  ;;  %v3796_v3 = vld [vmem:[#allocation4 + $0x158] sm:$0xff]  }
  0xa8   :  { %3364 = vmatprep.subr.bf16.mxu1 %v3780_v5  ;;  %v3797_v4 = vld [vmem:[#allocation4 + $0x1d8] sm:$0xff]  }
  0xa9   :  { %1113 = vmatmul.mubr.bf16.vlgmr.msra.gmra.mxu0 %v4052_v35  ;;  %v3773_v35 = vld [vmem:[#allocation4 + $0xc8] sm:$0xff]   ;;  %v3798_v5 = vld [vmem:[#allocation4 + $0x118] sm:$0xff]  }
  0xaa   :  { %3343 = vmatpush3.bf16.msra.mxu0 %v3751_v6  ;;  %v3799_v6 = vld [vmem:[#allocation4 + $0x198] sm:$0xff]  }
  0xab   :  { %3344 = vmatprep.subr.bf16.mxu0 %v3753_v7  ;;  %v3800_v7 = vld [vmem:[#allocation4 + $0x150] sm:$0xff]  }
  0xae   :  { %3345 = vmatpush3.bf16.msra.mxu0 %v3755_v8  ;;  %v3801_v8 = vld [vmem:[#allocation4 + $0x1d0] sm:$0xff]  }
  0xaf   :  { %3346 = vmatprep.subr.bf16.mxu0 %v3757_v9  ;;  %v212_v9 = vsub.s32 6, %v4066_v22 }
  0xb2   :  { %3347 = vmatpush3.bf16.msra.mxu0 %v3759_v10  ;;  %v3802_v10 = vld [vmem:[#allocation4 + $0x110] sm:$0xff]  }
  0xb3   :  { %3348 = vmatprep.subr.bf16.mxu0 %v3761_v11  ;;  %v3803_v11 = vld [vmem:[#allocation4 + $0x190] sm:$0xff]  }
  0xb6   :  { %3349 = vmatpush3.bf16.msra.mxu0 %v3763_v12  ;;  %v216_v12 = vsub.s32 7, %v4066_v22 }
  0xb7   :  { %3350 = vmatprep.subr.bf16.mxu0 %v3765_v13  ;;  %v3804_v13 = vld [vmem:[#allocation4 + $0x148] sm:$0xff]  }
  0xba   :  { %3351 = vmatpush3.bf16.msra.mxu0 %v3767_v14  ;;  %v3805_v14 = vld [vmem:[#allocation4 + $0x1c8] sm:$0xff]  }
  0xbb   :  { %3352 = vmatprep.subr.bf16.mxu0 %v3769_v15  ;;  %v208_v15 = vsub.s32 5, %v4066_v22 }
  0xbe   :  { %3353 = vmatpush3.bf16.msra.mxu0 %v3771_v16  ;;  %v204_v16 = vsub.s32 4, %v4066_v22 }
  0xbf   :  { %3354 = vmatprep.subr.bf16.mxu0 %v3773_v35 }
  0xc2   :  { %3355 = vmatpush3.bf16.msra.mxu0 %v3775_v17  ;;  %v213_v17 = vrot.slane %v4075_v27, %v212_v9  ;;  %v3833_v9 = vld [vmem:[#allocation4 + $0x2d0] sm:$0xff]  }
  0xc3   :  { %3356 = vmatprep.subr.bf16.mxu0 %v3777_v18 }
  0xc6   :  { %3357 = vmatpush3.bf16.msra.mxu0 %v3779_v19  ;;  %v217_v19 = vrot.slane %v4075_v27, %v216_v12  ;;  %v3836_v12 = vld [vmem:[#allocation4 + $0x248] sm:$0xff]  }
  0xc7   :  { %3386 = vmatprep.subr.bf16.mxu0 %v3781_v20  ;;  %v3806_v20 = vld [vmem:[#allocation4 + $0x108] sm:$0xff]  }
 0x109   :  { %v856_v28 = vpop.f32.mrf.mxu0  ;;  %v899_v30 = vpop.f32.mrf.mxu1 }
 0x10a   :  { %v900_v37 = vadd.f32 %v899_v30, %v197_v29  ;;  %v857_v48 = vadd.f32 %v856_v28, %v189_v36  ;;  %v3808_v30 = vld [vmem:[#allocation4 + $0x140] sm:$0xff]  }
 0x10b   :  { %v858_v32 = vpop.f32.mrf.mxu0  ;;  %v901_v33 = vpop.f32.mrf.mxu1 }
 0x10c   :  { %v902_v40 = vadd.f32 %v901_v33, %v201_v31  ;;  %v859_v45 = vadd.f32 %v858_v32, %v193_v34  ;;  %v209_v32 = vrot.slane %v4075_v27, %v208_v15  ;;  %v205_v33 = vrot.slane %v4075_v27, %v204_v16 }
 0x10d   :  { %v860_v38 = vpop.f32.mrf.mxu0  ;;  %v903_v39 = vpop.f32.mrf.mxu1 }
 0x10e   :  { %v904_v41 = vadd.f32 %v903_v39, %v197_v29  ;;  %v861_v42 = vadd.f32 %v860_v38, %v189_v36 }
 0x10f   :  { %v862_v43 = vpop.f32.mrf.mxu0  ;;  %v905_v44 = vpop.f32.mrf.mxu1 }
 0x110   :  { %v863_v46 = vadd.f32 %v862_v43, %v193_v34  ;;  %v906_v47 = vadd.f32 %v905_v44, %v201_v31  ;;  %v1125_v49 = vpack.c.bf16 %v904_v41, %v900_v37  ;;  %v1123_v53 = vpack.c.bf16 %v861_v42, %v857_v48  ;;  %v3809_v31 = vld [vmem:[#allocation4 + $0x1c0] sm:$0xff]  }
 0x111   :  { %v3811_v41 = vld [vmem:[#allocation4 + $0x180] sm:$0xff]  }
 0x112   :  { %v1124_v50 = vpack.c.bf16 %v863_v46, %v859_v45  ;;  %v1126_v51 = vpack.c.bf16 %v906_v47, %v902_v40  ;;  %v3810_v40 = vld [vmem:[#allocation4 + $0x100] sm:$0xff]   ;;  %v3812_v45 = vld [vmem:[#allocation4 + $0x278] sm:$0xff]  }
 0x113   :  { %v3813_v46 = vld [vmem:[#allocation4 + $0x2f8] sm:$0xff]  }
 0x114   :  { %1304 = vmatprep.mubr.bf16.mxu1 %v1124_v50  ;;  %1483 = vmatprep.mubr.bf16.mxu0 %v1126_v51 }
 0x115   :  { %1305 = vmatmul.mubr.bf16.vlgmr.msra.gmra.mxu1 %v1123_v53  ;;  %1484 = vmatmul.mubr.bf16.vlgmr.msra.gmra.mxu0 %v1125_v49  ;;  %v3815_v53 = vld [vmem:[#allocation4 + $0x2b8] sm:$0xff]  }
 0x116   :  { %3365 = vmatpush3.bf16.msra.mxu1 %v3782_v52  ;;  %3387 = vmatpush3.bf16.msra.mxu0 %v3783_v0  ;;  %v3814_v0 = vld [vmem:[#allocation4 + $0x238] sm:$0xff]  }
 0x117   :  { %3366 = vmatprep.subr.bf16.mxu1 %v3784_v54  ;;  %3388 = vmatprep.subr.bf16.mxu0 %v3785_v55  ;;  %v3816_v55 = vld [vmem:[#allocation4 + $0x270] sm:$0xff]  }
 0x11a   :  { %3367 = vmatpush3.bf16.msra.mxu1 %v3786_v56  ;;  %3389 = vmatpush3.bf16.msra.mxu0 %v3787_v57  ;;  %v3817_v56 = vld [vmem:[#allocation4 + $0x2f0] sm:$0xff]  }
 0x11b   :  { %3368 = vmatprep.subr.bf16.mxu1 %v3788_v58  ;;  %3390 = vmatprep.subr.bf16.mxu0 %v3789_v59  ;;  %v3818_v57 = vld [vmem:[#allocation4 + $0x230] sm:$0xff]   ;;  %v3820_v59 = vld [vmem:[#allocation4 + $0x268] sm:$0xff]  }
 0x11c   :  { %v3819_v58 = vld [vmem:[#allocation4 + $0x2b0] sm:$0xff]  }
 0x11e   :  { %3369 = vmatpush3.bf16.msra.mxu1 %v3790_v60  ;;  %3391 = vmatpush3.bf16.msra.mxu0 %v3791_v61  ;;  %v3821_v60 = vld [vmem:[#allocation4 + $0x2e8] sm:$0xff]  }
 0x11f   :  { %3370 = vmatprep.subr.bf16.mxu1 %v3792_v62  ;;  %3392 = vmatprep.subr.bf16.mxu0 %v3793_v63  ;;  %v3822_v61 = vld [vmem:[#allocation4 + $0x228] sm:$0xff]   ;;  %v3824_v63 = vld [vmem:[#allocation4 + $0x260] sm:$0xff]  }
 0x120   :  { %v3823_v62 = vld [vmem:[#allocation4 + $0x2a8] sm:$0xff]  }
 0x122   :  { %3371 = vmatpush3.bf16.msra.mxu1 %v3794_v1  ;;  %3393 = vmatpush3.bf16.msra.mxu0 %v3795_v2  ;;  %v3825_v1 = vld [vmem:[#allocation4 + $0x2e0] sm:$0xff]  }
 0x123   :  { %3372 = vmatprep.subr.bf16.mxu1 %v3796_v3  ;;  %3394 = vmatprep.subr.bf16.mxu0 %v3797_v4  ;;  %v3826_v2 = vld [vmem:[#allocation4 + $0x220] sm:$0xff]   ;;  %v3828_v4 = vld [vmem:[#allocation4 + $0x258] sm:$0xff]  }
 0x124   :  { %v3827_v3 = vld [vmem:[#allocation4 + $0x2a0] sm:$0xff]  }
 0x126   :  { %3373 = vmatpush3.bf16.msra.mxu1 %v3798_v5  ;;  %3395 = vmatpush3.bf16.msra.mxu0 %v3799_v6  ;;  %v3829_v5 = vld [vmem:[#allocation4 + $0x2d8] sm:$0xff]  }
 0x127   :  { %3374 = vmatprep.subr.bf16.mxu1 %v3800_v7  ;;  %3396 = vmatprep.subr.bf16.mxu0 %v3801_v8  ;;  %v3830_v6 = vld [vmem:[#allocation4 + $0x218] sm:$0xff]   ;;  %v3832_v8 = vld [vmem:[#allocation4 + $0x250] sm:$0xff]  }
 0x128   :  { %v3831_v7 = vld [vmem:[#allocation4 + $0x298] sm:$0xff]  }
 0x129   :  { %v942_v35 = vpop.f32.mrf.mxu0  ;;  %v985_v18 = vpop.f32.mrf.mxu1 }
 0x12a   :  { %3375 = vmatpush3.bf16.msra.mxu1 %v3802_v10  ;;  %3397 = vmatpush3.bf16.msra.mxu0 %v3803_v11  ;;  %v986_v34 = vadd.f32 %v985_v18, %v213_v17  ;;  %v943_v27 = vadd.f32 %v942_v35, %v205_v33  ;;  %v3834_v10 = vld [vmem:[#allocation4 + $0x210] sm:$0xff]  }
 0x12b   :  { %v944_v28 = vpop.f32.mrf.mxu0  ;;  %v987_v29 = vpop.f32.mrf.mxu1  ;;  %3376 = vmatprep.subr.bf16.mxu1 %v3804_v13  ;;  %3398 = vmatprep.subr.bf16.mxu0 %v3805_v14  ;;  %v3835_v11 = vld [vmem:[#allocation4 + $0x290] sm:$0xff]   ;;  %v3837_v13 = vld [vmem:[#allocation4 + $0x2c8] sm:$0xff]  }
 0x12c   :  { %v988_v38 = vadd.f32 %v987_v29, %v217_v19  ;;  %v945_v47 = vadd.f32 %v944_v28, %v209_v32  ;;  %v4104_v14 = vld [vmem:[%s4165_s2 + $0x8] sm:$0x3f] }
 0x12d   :  { %v946_v36 = vpop.f32.mrf.mxu0  ;;  %v989_v37 = vpop.f32.mrf.mxu1 }
 0x12e   :  { %v990_v39 = vadd.f32 %v989_v37, %v213_v17  ;;  %3377 = vmatpush3.bf16.msra.mxu1 %v3806_v20  ;;  %3399 = vmatpush3.bf16.msra.mxu0 %v3807_v21  ;;  %v947_v42 = vadd.f32 %v946_v36, %v205_v33  ;;  %v229_v17 = vrot.slane %v4104_v14, %v196_v25  ;;  %v3838_v20 = vld [vmem:[#allocation4 + $0x208] sm:$0xff]  }
 0x12f   :  { %v948_v43 = vpop.f32.mrf.mxu0  ;;  %v991_v44 = vpop.f32.mrf.mxu1  ;;  %3378 = vmatprep.subr.bf16.mxu1 %v3808_v30  ;;  %3400 = vmatprep.subr.bf16.mxu0 %v3809_v31  ;;  %v3839_v21 = vld [vmem:[#allocation4 + $0x288] sm:$0xff]   ;;  %v3840_v30 = vld [vmem:[#allocation4 + $0x240] sm:$0xff]   ;;  %v221_v25 = vrot.slane %v4104_v14, %v188_v23 }
 0x130   :  { %v949_v48 = vadd.f32 %v948_v43, %v209_v32  ;;  %v992_v49 = vadd.f32 %v991_v44, %v217_v19  ;;  %v1129_v50 = vpack.c.bf16 %v990_v39, %v986_v34  ;;  %v1127_v54 = vpack.c.bf16 %v947_v42, %v943_v27  ;;  %v3841_v31 = vld [vmem:[#allocation4 + $0x2c0] sm:$0xff]   ;;  %v3844_v43 = vld [vmem:[#allocation4 + $0x378] sm:$0xff]  }
 0x131   :  { %v233_v19 = vrot.slane %v4104_v14, %v200_v26  ;;  %v225_v32 = vrot.slane %v4104_v14, %v192_v24  ;;  %v3843_v39 = vld [vmem:[#allocation4 + $0x280] sm:$0xff]   ;;  %v3860_v24 = vld [vmem:[#allocation6 + $0x78] sm:$0xff]  }
 0x132   :  { %v1128_v51 = vpack.c.bf16 %v949_v48, %v945_v47  ;;  %v1130_v52 = vpack.c.bf16 %v992_v49, %v988_v38  ;;  %3379 = vmatpush3.bf16.msra.mxu1 %v3810_v40  ;;  %3401 = vmatpush3.bf16.msra.mxu0 %v3811_v41  ;;  %v3842_v38 = vld [vmem:[#allocation4 + $0x200] sm:$0xff]   ;;  %v3845_v27 = vld [vmem:[#allocation4 + $0x338] sm:$0xff]  }
 0x133   :  { %3408 = vmatprep.subr.bf16.mxu1 %v3812_v45  ;;  %3430 = vmatprep.subr.bf16.mxu0 %v3813_v46 }
 0x134   :  { %1662 = vmatprep.mubr.bf16.mxu1 %v1128_v51  ;;  %1841 = vmatprep.mubr.bf16.mxu0 %v1130_v52  ;;  %v3846_v52 = vld [vmem:[#allocation4 + $0x370] sm:$0xff]  }
 0x135   :  { %1663 = vmatmul.mubr.bf16.vlgmr.msra.gmra.mxu1 %v1127_v54  ;;  %1842 = vmatmul.mubr.bf16.vlgmr.msra.gmra.mxu0 %v1129_v50  ;;  %v3861_v50 = vld [vmem:[#allocation6 + $0x38] sm:$0xff]   ;;  %v3863_v54 = vld [vmem:[#allocation6 + $0x30] sm:$0xff]  }
 0x136   :  { %3409 = vmatpush3.bf16.msra.mxu1 %v3814_v0  ;;  %3431 = vmatpush3.bf16.msra.mxu0 %v3815_v53  ;;  %v3862_v0 = vld [vmem:[#allocation6 + $0x70] sm:$0xff]  }
 0x137   :  { %3410 = vmatprep.subr.bf16.mxu1 %v3816_v55  ;;  %3432 = vmatprep.subr.bf16.mxu0 %v3817_v56  ;;  %v3847_v53 = vld [vmem:[#allocation4 + $0x330] sm:$0xff]   ;;  %v3848_v55 = vld [vmem:[#allocation4 + $0x368] sm:$0xff]  }
 0x138   :  { %v3864_v56 = vld [vmem:[#allocation6 + $0x68] sm:$0xff]  }
 0x13a   :  { %3411 = vmatpush3.bf16.msra.mxu1 %v3818_v57  ;;  %3433 = vmatpush3.bf16.msra.mxu0 %v3819_v58  ;;  %v3849_v57 = vld [vmem:[#allocation4 + $0x328] sm:$0xff]  }
 0x13b   :  { %3412 = vmatprep.subr.bf16.mxu1 %v3820_v59  ;;  %3434 = vmatprep.subr.bf16.mxu0 %v3821_v60  ;;  %v3865_v58 = vld [vmem:[#allocation6 + $0x28] sm:$0xff]   ;;  %v3850_v59 = vld [vmem:[#allocation4 + $0x360] sm:$0xff]  }
 0x13c   :  { %v3866_v60 = vld [vmem:[#allocation6 + $0x60] sm:$0xff]  }
 0x13e   :  { %3413 = vmatpush3.bf16.msra.mxu1 %v3822_v61  ;;  %3435 = vmatpush3.bf16.msra.mxu0 %v3823_v62  ;;  %v3851_v61 = vld [vmem:[#allocation4 + $0x320] sm:$0xff]  }
 0x13f   :  { %3414 = vmatprep.subr.bf16.mxu1 %v3824_v63  ;;  %3436 = vmatprep.subr.bf16.mxu0 %v3825_v1  ;;  %v3867_v62 = vld [vmem:[#allocation6 + $0x20] sm:$0xff]   ;;  %v3852_v63 = vld [vmem:[#allocation4 + $0x358] sm:$0xff]  }
 0x140   :  { %v3868_v1 = vld [vmem:[#allocation6 + $0x58] sm:$0xff]  }
 0x142   :  { %3415 = vmatpush3.bf16.msra.mxu1 %v3826_v2  ;;  %3437 = vmatpush3.bf16.msra.mxu0 %v3827_v3  ;;  %v3853_v2 = vld [vmem:[#allocation4 + $0x318] sm:$0xff]  }
 0x143   :  { %3416 = vmatprep.subr.bf16.mxu1 %v3828_v4  ;;  %3438 = vmatprep.subr.bf16.mxu0 %v3829_v5  ;;  %v3869_v3 = vld [vmem:[#allocation6 + $0x18] sm:$0xff]   ;;  %v3854_v4 = vld [vmem:[#allocation4 + $0x350] sm:$0xff]  }
 0x144   :  { %v3870_v5 = vld [vmem:[#allocation6 + $0x50] sm:$0xff]  }
 0x146   :  { %3417 = vmatpush3.bf16.msra.mxu1 %v3830_v6  ;;  %3439 = vmatpush3.bf16.msra.mxu0 %v3831_v7  ;;  %v3855_v6 = vld [vmem:[#allocation4 + $0x310] sm:$0xff]  }
 0x147   :  { %3418 = vmatprep.subr.bf16.mxu1 %v3832_v8  ;;  %3440 = vmatprep.subr.bf16.mxu0 %v3833_v9  ;;  %v3871_v7 = vld [vmem:[#allocation6 + $0x10] sm:$0xff]   ;;  %v3856_v8 = vld [vmem:[#allocation4 + $0x348] sm:$0xff]  }
 0x148   :  { %v3872_v9 = vld [vmem:[#allocation6 + $0x48] sm:$0xff]  }
 0x149   :  { %v1028_v35 = vpop.f32.mrf.mxu0  ;;  %v1071_v18 = vpop.f32.mrf.mxu1 }
 0x14a   :  { %3419 = vmatpush3.bf16.msra.mxu1 %v3834_v10  ;;  %3441 = vmatpush3.bf16.msra.mxu0 %v3835_v11  ;;  %v1072_v33 = vadd.f32 %v1071_v18, %v229_v17  ;;  %v1029_v23 = vadd.f32 %v1028_v35, %v221_v25  ;;  %v3857_v11 = vld [vmem:[#allocation4 + $0x308] sm:$0xff]   ;;  %v3858_v35 = vld [vmem:[#allocation4 + $0x340] sm:$0xff]   ;;  %v241_v18 = vrot.slane %v4104_v14, %v208_v15  ;;  %v3877_v15 = vld [vmem:[#allocation6 + $0xb8] sm:$0xff]  }
 0x14b   :  { %v1030_v28 = vpop.f32.mrf.mxu0  ;;  %v1073_v29 = vpop.f32.mrf.mxu1  ;;  %3420 = vmatprep.subr.bf16.mxu1 %v3836_v12  ;;  %3442 = vmatprep.subr.bf16.mxu0 %v3837_v13  ;;  %v3873_v12 = vld [vmem:[#allocation6 + $0x8] sm:$0xff]  }
 0x14c   :  { %v1074_v26 = vadd.f32 %v1073_v29, %v233_v19  ;;  %v1031_v44 = vadd.f32 %v1030_v28, %v225_v32  ;;  %v3875_v28 = vld [vmem:[#allocation6] sm:$0xff]  }
 0x14d   :  { %v1032_v34 = vpop.f32.mrf.mxu0  ;;  %v1075_v36 = vpop.f32.mrf.mxu1 }
 0x14e   :  { %v1076_v37 = vadd.f32 %v1075_v36, %v229_v17  ;;  %3421 = vmatpush3.bf16.msra.mxu1 %v3838_v20  ;;  %3443 = vmatpush3.bf16.msra.mxu0 %v3839_v21  ;;  %v1033_v40 = vadd.f32 %v1032_v34, %v221_v25  ;;  %v3874_v17 = vld [vmem:[#allocation6 + $0x40] sm:$0xff]   ;;  %v3880_v36 = vld [vmem:[#allocation6 + $0xe8] sm:$0xff]  }
 0x14f   :  { %v1034_v41 = vpop.f32.mrf.mxu0  ;;  %v1077_v42 = vpop.f32.mrf.mxu1  ;;  %3422 = vmatprep.subr.bf16.mxu1 %v3840_v30  ;;  %3444 = vmatprep.subr.bf16.mxu0 %v3841_v31  ;;  %v3859_v21 = vld [vmem:[#allocation4 + $0x300] sm:$0xff]   ;;  %v3876_v31 = vld [vmem:[#allocation6 + $0xf8] sm:$0xff]  }
 0x150   :  { %v1035_v45 = vadd.f32 %v1034_v41, %v225_v32  ;;  %v1078_v46 = vadd.f32 %v1077_v42, %v233_v19  ;;  %v1133_v47 = vpack.c.bf16 %v1076_v37, %v1072_v33  ;;  %v1131_v51 = vpack.c.bf16 %v1033_v40, %v1029_v23  ;;  %v3882_v37 = vld [vmem:[#allocation6 + $0xe0] sm:$0xff]   ;;  %v3892_v40 = vld [vmem:[#allocation6 + $0x178] sm:$0xff]   ;;  %v3886_v42 = vld [vmem:[#allocation6 + $0xd0] sm:$0xff]  }
 0x151   :  { %v237_v19 = vrot.slane %v4104_v14, %v204_v16  ;;  %v3878_v16 = vld [vmem:[#allocation6 + $0xf0] sm:$0xff]   ;;  %v3885_v41 = vld [vmem:[#allocation6 + $0x98] sm:$0xff]   ;;  %v3996_v23 = vmov 0.0  }
 0x152   :  { %v1132_v48 = vpack.c.bf16 %v1035_v45, %v1031_v44  ;;  %v1134_v49 = vpack.c.bf16 %v1078_v46, %v1074_v26  ;;  %3423 = vmatpush3.bf16.msra.mxu1 %v3842_v38  ;;  %3445 = vmatpush3.bf16.msra.mxu0 %v3843_v39  ;;  %v3879_v14 = vld [vmem:[#allocation6 + $0xb0] sm:$0xff]   ;;  %v3881_v26 = vld [vmem:[#allocation6 + $0xa8] sm:$0xff]   ;;  %v3883_v38 = vld [vmem:[#allocation6 + $0xa0] sm:$0xff]  }
 0x153   :  { %3452 = vmatprep.subr.bf16.mxu1 %v3844_v43  ;;  %3474 = vmatprep.subr.bf16.mxu0 %v3860_v24  ;;  %v3884_v39 = vld [vmem:[#allocation6 + $0xd8] sm:$0xff]   ;;  %v3887_v43 = vld [vmem:[#allocation6 + $0x90] sm:$0xff]   ;;  %v3888_v24 = vld [vmem:[#allocation6 + $0xc8] sm:$0xff]  }
 0x154   :  { %2020 = vmatprep.mubr.bf16.mxu1 %v1132_v48  ;;  %2199 = vmatprep.mubr.bf16.mxu0 %v1134_v49  ;;  %v3889_v44 = vld [vmem:[#allocation6 + $0x88] sm:$0xff]   ;;  %v3890_v45 = vld [vmem:[#allocation6 + $0xc0] sm:$0xff]  }
 0x155   :  { %2021 = vmatmul.mubr.bf16.vlgmr.msra.gmra.mxu1 %v1131_v51  ;;  %2200 = vmatmul.mubr.bf16.vlgmr.msra.gmra.mxu0 %v1133_v47  ;;  %v3891_v46 = vld [vmem:[#allocation6 + $0x80] sm:$0xff]  }
 0x156   :  { %3453 = vmatpush3.bf16.msra.mxu1 %v3845_v27  ;;  %3475 = vmatpush3.bf16.msra.mxu0 %v3861_v50  ;;  %v3156_v51 = vld [vmem:[%s4167_s4 + $0x1] ss:$0 sm:$0xff] }
 0x157   :  { %3454 = vmatprep.subr.bf16.mxu1 %v3846_v52  ;;  %3476 = vmatprep.subr.bf16.mxu0 %v3862_v0 }
 0x15a   :  { %3455 = vmatpush3.bf16.msra.mxu1 %v3847_v53  ;;  %3477 = vmatpush3.bf16.msra.mxu0 %v3863_v54  ;;  %v3138_v54 = vld [vmem:[%s4167_s4] ss:$0 sm:$0xff] }
 0x15b   :  { %3456 = vmatprep.subr.bf16.mxu1 %v3848_v55  ;;  %3478 = vmatprep.subr.bf16.mxu0 %v3864_v56 }
 0x15e   :  { %3457 = vmatpush3.bf16.msra.mxu1 %v3849_v57  ;;  %3479 = vmatpush3.bf16.msra.mxu0 %v3865_v58 }
 0x15f   :  { %3458 = vmatprep.subr.bf16.mxu1 %v3850_v59  ;;  %3480 = vmatprep.subr.bf16.mxu0 %v3866_v60 }
 0x162   :  { %3459 = vmatpush3.bf16.msra.mxu1 %v3851_v61  ;;  %3481 = vmatpush3.bf16.msra.mxu0 %v3867_v62 }
 0x163   :  { %3460 = vmatprep.subr.bf16.mxu1 %v3852_v63  ;;  %3482 = vmatprep.subr.bf16.mxu0 %v3868_v1 }
 0x166   :  { %3461 = vmatpush3.bf16.msra.mxu1 %v3853_v2  ;;  %3483 = vmatpush3.bf16.msra.mxu0 %v3869_v3  ;;  %v3893_v2 = vld [vmem:[#allocation6 + $0x138] sm:$0xff]   ;;  %v3894_v3 = vld [vmem:[#allocation6 + $0x170] sm:$0xff]  }
 0x167   :  { %3462 = vmatprep.subr.bf16.mxu1 %v3854_v4  ;;  %3484 = vmatprep.subr.bf16.mxu0 %v3870_v5  ;;  %v3895_v4 = vld [vmem:[#allocation6 + $0x130] sm:$0xff]   ;;  %v3896_v5 = vld [vmem:[#allocation6 + $0x168] sm:$0xff]  }
 0x169   :  { %v1114_v10 = vpop.f32.mrf.mxu0 }
 0x16a   :  { %3463 = vmatpush3.bf16.msra.mxu1 %v3855_v6  ;;  %3485 = vmatpush3.bf16.msra.mxu0 %v3871_v7  ;;  %v1115_v33 = vadd.f32 %v1114_v10, %v237_v19  ;;  %v3897_v6 = vld [vmem:[#allocation6 + $0x128] sm:$0xff]   ;;  %v3898_v7 = vld [vmem:[#allocation6 + $0x160] sm:$0xff]   ;;  %v3901_v10 = vld [vmem:[#allocation6 + $0x118] sm:$0xff]  }
 0x16b   :  { %v1116_v13 = vpop.f32.mrf.mxu0  ;;  %3464 = vmatprep.subr.bf16.mxu1 %v3856_v8  ;;  %3486 = vmatprep.subr.bf16.mxu0 %v3872_v9  ;;  %v3899_v8 = vld [vmem:[#allocation6 + $0x120] sm:$0xff]   ;;  %v3900_v9 = vld [vmem:[#allocation6 + $0x158] sm:$0xff]  }
 0x16c   :  { %v1117_v32 = vadd.f32 %v1116_v13, %v241_v18 }
 0x16d   :  { %v1118_v20 = vpop.f32.mrf.mxu0 }
 0x16e   :  { %3465 = vmatpush3.bf16.msra.mxu1 %v3857_v11  ;;  %3487 = vmatpush3.bf16.msra.mxu0 %v3873_v12  ;;  %v1119_v29 = vadd.f32 %v1118_v20, %v237_v19  ;;  %v3902_v11 = vld [vmem:[#allocation6 + $0x150] sm:$0xff]  }
 0x16f   :  { %v1120_v30 = vpop.f32.mrf.mxu0  ;;  %3466 = vmatprep.subr.bf16.mxu1 %v3858_v35  ;;  %3488 = vmatprep.subr.bf16.mxu0 %v3874_v17  ;;  %v3903_v12 = vld [vmem:[#allocation6 + $0x110] sm:$0xff]   ;;  %v3904_v17 = vld [vmem:[#allocation6 + $0x148] sm:$0xff]  }
 0x170   :  { %v1121_v25 = vadd.f32 %v1120_v30, %v241_v18  ;;  %v1135_v22 = vpack.c.bf16 %v1119_v29, %v1115_v33 }
 0x172   :  { %v1136_v34 = vpack.c.bf16 %v1121_v25, %v1117_v32  ;;  %3467 = vmatpush3.bf16.msra.mxu1 %v3859_v21  ;;  %3489 = vmatpush3.bf16.msra.mxu0 %v3875_v28  ;;  %v3905_v21 = vld [vmem:[#allocation6 + $0x108] sm:$0xff]   ;;  %v3192_v28 = vld [vmem:[%s4167_s4 + $0x3] ss:$0 sm:$0xff]  ;;  %v3174_v25 = vld [vmem:[%s4167_s4 + $0x2] ss:$0 sm:$0xff] }
 0x173   :  { %3496 = vmatprep.subr.bf16.mxu1 %v3876_v31  ;;  %3518 = vmatprep.subr.bf16.mxu0 %v3892_v40  ;;  %v3906_v31 = vld [vmem:[#allocation6 + $0x140] sm:$0xff]   ;;  %v3908_v40 = vld [vmem:[#allocation6 + $0x1b8] sm:$0xff]  }
 0x174   :  { %2378 = vmatprep.mubr.bf16.mxu1 %v1136_v34 }
 0x175   :  { %2379 = vmatmul.mubr.bf16.vlgmr.msra.gmra.mxu1 %v1135_v22 }
 0x176   :  { %3497 = vmatpush3.bf16.msra.mxu1 %v3877_v15 }
 0x177   :  { %3498 = vmatprep.subr.bf16.mxu1 %v3878_v16 }
 0x17a   :  { %3499 = vmatpush3.bf16.msra.mxu1 %v3879_v14  ;;  %v3907_v14 = vld [vmem:[#allocation6 + $0x100] sm:$0xff]  }
 0x17b   :  { %3500 = vmatprep.subr.bf16.mxu1 %v3880_v36 }
 0x17e   :  { %3501 = vmatpush3.bf16.msra.mxu1 %v3881_v26 }
 0x17f   :  { %3502 = vmatprep.subr.bf16.mxu1 %v3882_v37 }
 0x182   :  { %3503 = vmatpush3.bf16.msra.mxu1 %v3883_v38 }
 0x183   :  { %3504 = vmatprep.subr.bf16.mxu1 %v3884_v39 }
 0x186   :  { %3505 = vmatpush3.bf16.msra.mxu1 %v3885_v41  ;;  %v3909_v41 = vld [vmem:[#allocation6 + $0x1b0] sm:$0xff]  }
 0x187   :  { %3506 = vmatprep.subr.bf16.mxu1 %v3886_v42  ;;  %v3910_v42 = vld [vmem:[#allocation6 + $0x1a8] sm:$0xff]  }
 0x18a   :  { %3507 = vmatpush3.bf16.msra.mxu1 %v3887_v43  ;;  %v3911_v43 = vld [vmem:[#allocation6 + $0x1a0] sm:$0xff]  }
 0x18b   :  { %3508 = vmatprep.subr.bf16.mxu1 %v3888_v24  ;;  %v3912_v24 = vld [vmem:[#allocation6 + $0x198] sm:$0xff]  }
 0x18e   :  { %3509 = vmatpush3.bf16.msra.mxu1 %v3889_v44  ;;  %v3913_v44 = vld [vmem:[#allocation6 + $0x190] sm:$0xff]  }
 0x18f   :  { %3510 = vmatprep.subr.bf16.mxu1 %v3890_v45 }
 0x192   :  { %3511 = vmatpush3.bf16.msra.mxu1 %v3891_v46 }
 0x193   :  { %3549 = vmatprep.subr.bf16.mxu1 %v3996_v23 }
 0x1d5   :  { %v3336_v47 = vpop.f32.mrf.mxu1  ;;  %v3358_v48 = vpop.f32.mrf.mxu0 }
 0x1d7   :  { %v3337_v49 = vpop.f32.mrf.mxu1  ;;  %v3359_v27 = vpop.f32.mrf.mxu0 }
 0x1d8   :  { %v3360_v50 = vadd.f32 %v3359_v27, %v3358_v48  ;;  %v3338_v53 = vadd.f32 %v3337_v49, %v3336_v47  ;;  %v3914_v27 = vld [vmem:[#allocation6 + $0x188] sm:$0xff]  }
 0x1d9   :  { %v3339_v52 = vpop.f32.mrf.mxu1  ;;  %v3361_v0 = vpop.f32.mrf.mxu0 }
 0x1da   :  { %v1486_v57 = vadd.f32 %v3360_v50, %v3156_v51  ;;  %v1307_v60 = vadd.f32 %v3338_v53, %v3138_v54  ;;  %v3228_v50 = vld [vmem:[%s4167_s4 + $0x5] ss:$0 sm:$0xff]  ;;  %v3210_v53 = vld [vmem:[%s4167_s4 + $0x4] ss:$0 sm:$0xff] }
 0x1db   :  { %v3340_v55 = vpop.f32.mrf.mxu1  ;;  %v3362_v56 = vpop.f32.mrf.mxu0 }
 0x1dc   :  { %v3341_v58 = vadd.f32 %v3340_v55, %v3339_v52  ;;  %v3363_v59 = vadd.f32 %v3362_v56, %v3361_v0 }
 0x1de   :  { %v1310_v61 = vadd.f32 %v3341_v58, %v3138_v54  ;;  %v1489_v62 = vadd.f32 %v3363_v59, %v3156_v51  ;;  %v3915_v59 = vld [vmem:[#allocation6 + $0x180] sm:$0xff]  }
 0x1e0   :  { %v1313_v63 = vpack.c.bf16 %v1310_v61, %v1307_v60  ;;  %v1492_v1 = vpack.c.bf16 %v1489_v62, %v1486_v57 }
 0x1e2   :  { %2875 = vmatprep.mubr.bf16.mxu0 %v1492_v1 }
 0x1e3   :  { %2876 = vmatmul.mubr.bf16.vlgmr.msra.gmra.mxu0 %v1313_v63 }
 0x1e4   :  { %3519 = vmatpush3.bf16.msra.mxu0 %v3893_v2 }
 0x1e5   :  { %3520 = vmatprep.subr.bf16.mxu0 %v3894_v3 }
 0x1e8   :  { %3521 = vmatpush3.bf16.msra.mxu0 %v3895_v4 }
 0x1e9   :  { %3522 = vmatprep.subr.bf16.mxu0 %v3896_v5 }
 0x1ec   :  { %3523 = vmatpush3.bf16.msra.mxu0 %v3897_v6  ;;  %v3246_v6 = vld [vmem:[%s4167_s4 + $0x6] ss:$0 sm:$0xff] }
 0x1ed   :  { %3524 = vmatprep.subr.bf16.mxu0 %v3898_v7 }
 0x1f0   :  { %3525 = vmatpush3.bf16.msra.mxu0 %v3899_v8 }
 0x1f1   :  { %3526 = vmatprep.subr.bf16.mxu0 %v3900_v9 }
 0x1f4   :  { %3527 = vmatpush3.bf16.msra.mxu0 %v3901_v10 }
 0x1f5   :  { %v3380_v13 = vpop.f32.mrf.mxu1  ;;  %v3402_v35 = vpop.f32.mrf.mxu0  ;;  %3528 = vmatprep.subr.bf16.mxu0 %v3902_v11 }
 0x1f7   :  { %v3381_v18 = vpop.f32.mrf.mxu1  ;;  %v3403_v19 = vpop.f32.mrf.mxu0 }
 0x1f8   :  { %v3404_v20 = vadd.f32 %v3403_v19, %v3402_v35  ;;  %3529 = vmatpush3.bf16.msra.mxu0 %v3903_v12  ;;  %v3382_v32 = vadd.f32 %v3381_v18, %v3380_v13 }
 0x1f9   :  { %v3383_v29 = vpop.f32.mrf.mxu1  ;;  %v3405_v30 = vpop.f32.mrf.mxu0  ;;  %3530 = vmatprep.subr.bf16.mxu0 %v3904_v17 }
 0x1fa   :  { %v1844_v15 = vadd.f32 %v3404_v20, %v3192_v28  ;;  %v1665_v36 = vadd.f32 %v3382_v32, %v3174_v25 }
 0x1fb   :  { %v3384_v33 = vpop.f32.mrf.mxu1  ;;  %v3406_v34 = vpop.f32.mrf.mxu0 }
 0x1fc   :  { %v3385_v22 = vadd.f32 %v3384_v33, %v3383_v29  ;;  %v3407_v16 = vadd.f32 %v3406_v34, %v3405_v30  ;;  %3531 = vmatpush3.bf16.msra.mxu0 %v3905_v21  ;;  %v3263_v29 = vld [vmem:[%s4169_s6] ss:$0 sm:$0xff] }
 0x1fd   :  { %3532 = vmatprep.subr.bf16.mxu0 %v3906_v31 }
 0x1fe   :  { %v1668_v26 = vadd.f32 %v3385_v22, %v3174_v25  ;;  %v1847_v37 = vadd.f32 %v3407_v16, %v3192_v28 }
 0x200   :  { %v1671_v38 = vpack.c.bf16 %v1668_v26, %v1665_v36  ;;  %v1850_v39 = vpack.c.bf16 %v1847_v37, %v1844_v15  ;;  %3533 = vmatpush3.bf16.msra.mxu0 %v3907_v14 }
 0x202   :  { %2916 = vmatprep.mubr.bf16.mxu1 %v1850_v39 }
 0x203   :  { %2917 = vmatmul.mubr.bf16.vlgmr.msra.gmra.mxu1 %v1671_v38 }
 0x204   :  { %3550 = vmatpush3.bf16.msra.mxu1 %v3908_v40  ;;  %3565 = vmatprep.mubr.msk.bf16.mxu1 %vm3997_vm0, %v3996_v23 }
 0x205   :  { %3551 = vmatprep.subr.bf16.mxu1 %v3996_v23 }
 0x208   :  { %3552 = vmatpush3.bf16.msra.mxu1 %v3909_v41 }
 0x209   :  { %3553 = vmatprep.subr.bf16.mxu1 %v3996_v23 }
 0x20c   :  { %3554 = vmatpush3.bf16.msra.mxu1 %v3910_v42 }
 0x20d   :  { %3555 = vmatprep.subr.bf16.mxu1 %v3996_v23 }
 0x210   :  { %3556 = vmatpush3.bf16.msra.mxu1 %v3911_v43 }
 0x211   :  { %3557 = vmatprep.subr.bf16.mxu1 %v3996_v23 }
 0x214   :  { %3558 = vmatpush3.bf16.msra.mxu1 %v3912_v24 }
 0x215   :  { %v3424_v45 = vpop.f32.mrf.mxu1  ;;  %v3446_v46 = vpop.f32.mrf.mxu0  ;;  %3559 = vmatprep.subr.bf16.mxu1 %v3996_v23 }
 0x217   :  { %v3425_v47 = vpop.f32.mrf.mxu1  ;;  %v3447_v48 = vpop.f32.mrf.mxu0 }
 0x218   :  { %v3448_v49 = vadd.f32 %v3447_v48, %v3446_v46  ;;  %3560 = vmatpush3.bf16.msra.mxu1 %v3913_v44  ;;  %v3426_v0 = vadd.f32 %v3425_v47, %v3424_v45 }
 0x219   :  { %v3427_v51 = vpop.f32.mrf.mxu1  ;;  %v3449_v52 = vpop.f32.mrf.mxu0  ;;  %3561 = vmatprep.subr.bf16.mxu1 %v3996_v23 }
 0x21a   :  { %v2202_v56 = vadd.f32 %v3448_v49, %v3228_v50  ;;  %v2023_v60 = vadd.f32 %v3426_v0, %v3210_v53 }
 0x21b   :  { %v3428_v54 = vpop.f32.mrf.mxu1  ;;  %v3450_v55 = vpop.f32.mrf.mxu0 }
 0x21c   :  { %v3429_v57 = vadd.f32 %v3428_v54, %v3427_v51  ;;  %v3451_v58 = vadd.f32 %v3450_v55, %v3449_v52  ;;  %3562 = vmatpush3.bf16.msra.mxu1 %v3914_v27 }
 0x21d   :  { %3563 = vmatprep.subr.bf16.mxu1 %v3996_v23 }
 0x21e   :  { %v2026_v61 = vadd.f32 %v3429_v57, %v3210_v53  ;;  %v2205_v62 = vadd.f32 %v3451_v58, %v3228_v50 }
 0x220   :  { %v2029_v63 = vpack.c.bf16 %v2026_v61, %v2023_v60  ;;  %v2208_v1 = vpack.c.bf16 %v2205_v62, %v2202_v56  ;;  %3564 = vmatpush3.bf16.msra.mxu1 %v3915_v59 }
 0x222   :  { %2957 = vmatprep.mubr.bf16.mxu0 %v2208_v1 }
 0x223   :  { %2958 = vmatmul.mubr.bf16.vlgmr.msra.gmra.mxu0 %v2029_v63 }
 0x235   :  { %v3468_v2 = vpop.f32.mrf.mxu1 }
 0x237   :  { %v3469_v3 = vpop.f32.mrf.mxu1 }
 0x238   :  { %v3470_v5 = vadd.f32 %v3469_v3, %v3468_v2 }
 0x239   :  { %v3471_v4 = vpop.f32.mrf.mxu1 }
 0x23a   :  { %v2381_v9 = vadd.f32 %v3470_v5, %v3246_v6 }
 0x23b   :  { %v3472_v7 = vpop.f32.mrf.mxu1 }
 0x23c   :  { %v3473_v8 = vadd.f32 %v3472_v7, %v3471_v4 }
 0x23e   :  { %v2384_v23 = vadd.f32 %v3473_v8, %v3246_v6 }
 0x240   :  { %v2387_v10 = vpack.c.bf16 %v2384_v23, %v2381_v9 }
 0x242   :  { %3566 = vmatmul.mubr.bf16.vlgmr.msra.gmra.mxu1 %v2387_v10 }
 0x2a3   :  { %v3490_v11 = vpop.f32.mrf.mxu0 }
 0x2a5   :  { %v3491_v12 = vpop.f32.mrf.mxu0 }
 0x2a6   :  { %v3492_v28 = vadd.f32 %v3491_v12, %v3490_v11 }
 0x2a7   :  { %v3493_v13 = vpop.f32.mrf.mxu0 }
 0x2a8   :  { %v2878_v25 = vadd.f32 %v3492_v28, %v3263_v29 }
 0x2a9   :  { %v3494_v35 = vpop.f32.mrf.mxu0 }
 0x2aa   :  { %v3495_v33 = vadd.f32 %v3494_v35, %v3493_v13 }
 0x2ac   :  { %v2881_v14 = vadd.f32 %v3495_v33, %v3263_v29 }
 0x2c3   :  { %v3512_v17 = vpop.f32.mrf.mxu1 }
 0x2c5   :  { %v3513_v19 = vpop.f32.mrf.mxu1 }
 0x2c6   :  { %v3514_v31 = vadd.f32 %v3513_v19, %v3512_v17 }
 0x2c7   :  { %v3515_v21 = vpop.f32.mrf.mxu1 }
 0x2c8   :  { %v2919_v22 = vadd.f32 %v3514_v31, %v2878_v25 }
 0x2c9   :  { %v3516_v32 = vpop.f32.mrf.mxu1 }
 0x2ca   :  { %v3517_v16 = vadd.f32 %v3516_v32, %v3515_v21 }
 0x2cc   :  { %v2922_v38 = vadd.f32 %v3517_v16, %v2881_v14 }
 0x2e3   :  { %v3534_v18 = vpop.f32.mrf.mxu0 }
 0x2e5   :  { %v3535_v20 = vpop.f32.mrf.mxu0 }
 0x2e6   :  { %v3536_v34 = vadd.f32 %v3535_v20, %v3534_v18 }
 0x2e7   :  { %v3537_v30 = vpop.f32.mrf.mxu0 }
 0x2e8   :  { %v2960_v26 = vadd.f32 %v3536_v34, %v2919_v22 }
 0x2e9   :  { %v3538_v15 = vpop.f32.mrf.mxu0 }
 0x2ea   :  { %v3539_v36 = vadd.f32 %v3538_v15, %v3537_v30 }
 0x2ec   :  { %v2963_v42 = vadd.f32 %v3539_v36, %v2922_v38 }
 0x302   :  { %v3000_v37 = vpop.f32.mrf.mxu1 }
 0x303   :  { %v3001_v39 = vadd.f32 %v3000_v37, %v2960_v26 }
 0x304   :  { %v3567_v40 = vpop.f32.mrf.mxu1 }
 0x305   :  { %v3007_v41 = vsub.f32 0.0, %v3001_v39 }
 0x306   :  { %v3003_v43 = vpop.f32.mrf.mxu1 }
 0x307   :  { %v3009_v24 = vmul.f32 1.442695, %v3007_v41  ;;  %v3004_v44 = vadd.f32 %v3003_v43, %v2963_v42 }
 0x308   :  { %v3568_v45 = vpop.f32.mrf.mxu1 }
 0x309   :  { %3916 = vpow2.f32 %v3009_v24  ;;  %v3008_v46 = vsub.f32 0.0, %v3004_v44 }
 0x30b   :  { %v3011_v47 = vmul.f32 1.442695, %v3008_v46 }
 0x30d   :  { %3918 = vpow2.f32 %v3011_v47 }
 0x316   :  { %v3917_v48 = vpop.eup %3916 }
 0x317   :  { %v3013_v49 = vadd.f32 1.0, %v3917_v48 }
 0x319   :  { %3920 = vrcp.f32 %v3013_v49 }
 0x31a   :  { %v3919_v27 = vpop.eup %3918 }
 0x31b   :  { %v3014_v50 = vadd.f32 1.0, %v3919_v27 }
 0x31d   :  { %3922 = vrcp.f32 %v3014_v50 }
 0x326   :  { %v3921_v51 = vpop.eup %3920 }
 0x327   :  { %3017 = vst [vmem:[%s4170_s7] sm:$0xff] %v3921_v51 }
 0x32a   :  { %v3923_v52 = vpop.eup %3922 }
 0x32b   :  { %3018 = vst [vmem:[%s4170_s7 + $0x8] sm:$0xff] %v3923_v52 }
 0x32c   :  { %3023 = vsyncpa [#allocation3], 1 }
 0x32d   :  { %3024 = vsyncpa [#allocation5], 1 }

</bundles_post_ra>
